<compile_context>
chip_gen: v6e
topology: v6e:2x2x1
jax: 0.10.0
libtpu: 0.0.40
codegen_flags: <defaults>
</compile_context>

<pallas_src>
import functools
import math

import jax
import jax.numpy as jnp
from jax import lax
from jax.experimental import pallas as pl
from jax.experimental.pallas import tpu as pltpu


def _round_up(x, m):
    return ((x + m - 1) // m) * m


# ---------------------------------------------------------------------------
# Kernel
# ---------------------------------------------------------------------------
def _fine_matching_kernel(f0c_ref, f1_ref, sel_ref, mom_ref, out_ref, *, W, C):
    """One M-tile of fine matching.

    f0c_ref: [TM, C]      center-pixel features of window 0 (pre-sliced, compute dtype)
    f1_ref : [TM, WW*C]   window-1 features, flattened row-major (compute dtype)
    sel_ref: [WW*C, WW]   constant 0/1 segment selector: sel[r*C + c, r] = 1
    mom_ref: [WW, 8]      constant f32 moment matrix: [1, uc, vc, uc^2, vc^2, 0, 0, 0]
                          with uc = u - (W-1)/2, vc = v - (W-1)/2 (centered coords)
    out_ref: [TM, 3]      (x_norm, y_norm, std)
    """
    WW = sel_ref.shape[1]

    # Keep the block-sized temporaries in the input dtype (bf16 stays bf16):
    # the vst slot / VMEM, not the VPU, saturate first after HBM.
    f0p = f0c_ref[...]                                           # [TM, C]
    f1 = f1_ref[...]                                             # [TM, WW*C]

    # sim[m, r] = sum_c f0p[m, c] * f1[m, r*C + c]
    # Lane-replicate f0p across the WW groups, multiply on the VPU, and let
    # the MXU do the segmented sum via a constant 0/1 selector (no batched
    # mat-vec, no XLU 32-lane reductions).  On v6e/v7x with bf16 inputs this
    # selector matmul is the critical unit (~70% of roofline) — accepted.
    f0t = jnp.concatenate([f0p] * WW, axis=1)                    # [TM, WW*C]
    prod = f1 * f0t                                              # [TM, WW*C]
    sim = jnp.dot(prod, sel_ref[...],
                  preferred_element_type=jnp.float32)            # [TM, WW] f32

    # Temperature softmax, numerically stabilized; p stays *unnormalized*
    # (the denominator — ones column — is folded into the moment matmul).
    # The temperature multiply is on the tiny [TM, WW] array: negligible and
    # numerically cleaner in f32 than folding a rounded constant into sel.
    s = sim * (1.0 / math.sqrt(C))
    s = s - jnp.max(s, axis=1, keepdims=True)
    p = jnp.exp(s)                                               # [TM, WW] f32
    # NOTE: rows past the valid M in the ragged last tile operate on stale
    # VMEM; their outputs are discarded by the masked writeback.

    # Raw moments over centered coords; HIGHEST precision keeps the variance
    # (E[uc^2] - E[uc]^2) clean even for peaked heatmaps.  K = WW <= 64 -> ~free.
    mom = jnp.dot(p, mom_ref[...],
                  preferred_element_type=jnp.float32,
                  precision=lax.Precision.HIGHEST)               # [TM, 8]
    inv0 = 1.0 / mom[:, 0:1]                                     # 1 / sum(p)
    euc = mom[:, 1:2] * inv0
    evc = mom[:, 2:3] * inv0
    euu = mom[:, 3:4] * inv0
    evv = mom[:, 4:5] * inv0

    # kornia normalized meshgrid: gx = u * 2/(W-1) - 1 = uc * 2/(W-1)  (W > 1)
    a = 2.0 / (W - 1) if W > 1 else 0.0
    b = 0.0 if W > 1 else -1.0                                   # W == 1 -> coord = -1
    ex = euc * a + b
    ey = evc * a + b
    vx = (euu - euc * euc) * (a * a)                             # Var[gx]
    vy = (evv - evc * evc) * (a * a)                             # Var[gy]
    std = (jnp.sqrt(jnp.maximum(vx, 1e-10)) +
           jnp.sqrt(jnp.maximum(vy, 1e-10)))

    out_ref[...] = jnp.concatenate([ex, ey, std], axis=1)        # [TM, 3]


# ---------------------------------------------------------------------------
# Constants
# ---------------------------------------------------------------------------
def _segment_selector(WW, C):
    """[WW*C, WW] 0/1 matrix summing each contiguous C-wide lane group."""
    k = jnp.arange(WW * C, dtype=jnp.int32)[:, None]
    r = jnp.arange(WW, dtype=jnp.int32)[None, :]
    return (k // C == r).astype(jnp.float32)


def _moment_matrix(W, WW):
    """[WW, 8] columns = [1, uc, vc, uc*uc, vc*vc, 0, 0, 0], centered coords."""
    r = jnp.arange(WW, dtype=jnp.int32)
    c0 = (W - 1) / 2.0
    u = (r % W).astype(jnp.float32) - c0      # centered x index
    v = (r // W).astype(jnp.float32) - c0     # centered y index
    one = jnp.ones((WW,), jnp.float32)
    zero = jnp.zeros((WW,), jnp.float32)
    return jnp.stack([one, u, v, u * u, v * v, zero, zero, zero], axis=1)


# ---------------------------------------------------------------------------
# VMEM budgeting / tile picking
# ---------------------------------------------------------------------------
def _vmem_limit_bytes():
    """Generation-aware scoped-VMEM limit: ~70% of per-core capacity."""
    cap = 64 * 1024 * 1024  # conservative fallback (v7x per-TensorCore VMEM)
    try:
        info = pltpu.get_tpu_info()
        cap = int(getattr(info, "vmem_capacity_bytes", cap) or cap)
    except Exception:
        pass
    return max(32 * 1024 * 1024, min(int(0.70 * cap), 100 * 1024 * 1024))


def _pick_tile_m(M, WW, C, in_itemsize, comp_itemsize, vmem_limit, max_tm=512):
    """Largest M-tile (multiple of 8, <= max_tm) fitting the VMEM limit,
    steered to an even (>=2) grid-step count for v7x megacore balance."""
    WWC = WW * C
    # Resident constants (double-buffered, lane-padded): sel [WWC, WW] + mom.
    sel_lanes = max(_round_up(WW, 128), 128)
    const_bytes = 2 * WWC * sel_lanes * comp_itemsize
    const_bytes += 2 * _round_up(WW, 8) * 128 * 4
    # Per M-row: double-buffered f1 block + ~3 block-sized temporaries
    # (replicated f0, product, MXU staging) + double-buffered f0c block
    # + small f32 [TM, 128-lane] arrays (sim/p/s) + output.
    per_row = (WWC * (2 * in_itemsize + 3 * comp_itemsize)
               + 2 * C * in_itemsize
               + 3 * 128 * 4 + 64)
    budget = vmem_limit - const_bytes - (2 << 20)   # 2 MiB slack for scratch
    tm = max(8, min(max_tm, (budget // per_row) // 8 * 8))

    # Even number of grid steps (>=2 when M > 8) so both v7x TCs stay busy.
    g = -(-M // tm)
    if g == 1 and M > 8:
        g = 2
    elif g > 1 and (g % 2 == 1):
        g += 1
    tm = max(8, min(tm, _round_up(-(-M // g), 8)))
    return int(tm)


# ---------------------------------------------------------------------------
# Wrapper
# ---------------------------------------------------------------------------
@functools.partial(jax.jit, static_argnames=("tile_m",))
def fine_matching_pallas(feat_f0, feat_f1, tile_m=None):
    """Returns expec_f [M, 3] = (x_norm, y_norm, std)."""
    M, WW, C = feat_f0.shape
    W = int(round(math.sqrt(WW)))
    assert W * W == WW, "WW must be a perfect square"

    if M == 0:                                   # empty-match path (eval only)
        return jnp.zeros((0, 3), jnp.float32)

    WWC = WW * C
    comp_dtype = feat_f1.dtype                   # bf16 inputs -> bf16 path
    in_item = feat_f1.dtype.itemsize
    comp_item = jnp.dtype(comp_dtype).itemsize

    vmem_limit = _vmem_limit_bytes()
    tm = tile_m if tile_m is not None else _pick_tile_m(
        M, WW, C, in_item, comp_item, vmem_limit)
    grid = (pl.cdiv(M, tm),)                     # ragged last tile, no padding

    # Contiguous [M, C] center-pixel pick (avoids sub-512B strided block DMA).
    f0c = feat_f0[:, WW // 2, :].astype(comp_dtype)
    f1_flat = feat_f1.reshape(M, WWC)            # free: row-major bitcast in HBM
    sel = _segment_selector(WW, C).astype(comp_dtype)   # bf16 when inputs bf16
    mom = _moment_matrix(W, WW)                  # tiny, stays f32

    kernel = functools.partial(_fine_matching_kernel, W=W, C=C)

    return pl.pallas_call(
        kernel,
        out_shape=jax.ShapeDtypeStruct((M, 3), jnp.float32),
        grid_spec=pltpu.PrefetchScalarGridSpec(
            num_scalar_prefetch=0,
            grid=grid,
            in_specs=[
                pl.BlockSpec((tm, C), lambda i: (i, 0)),
                pl.BlockSpec((tm, WWC), lambda i: (i, 0)),
                # constants: same block every step -> kept resident in VMEM
                pl.BlockSpec((WWC, WW), lambda i: (0, 0)),
                pl.BlockSpec((WW, 8), lambda i: (0, 0)),
            ],
            out_specs=pl.BlockSpec((tm, 3), lambda i: (i, 0)),
        ),
        compiler_params=pltpu.CompilerParams(
            # single parallel M axis -> megacore sharding on v7x
            dimension_semantics=("parallel",),
            vmem_limit_bytes=vmem_limit,
        ),
    )(f0c, f1_flat, sel, mom)


def fine_matching_forward(feat_f0, feat_f1, data):
    """Full FineMatching.forward semantics.

    data: dict with 'hw0_i', 'hw0_f', 'mkpts0_c', 'mkpts1_c', 'mconf'
          (no 'scale0' key -> scale1 = scale, as in the reference module).
    Returns dict with 'expec_f', 'mkpts0_f', 'mkpts1_f'.
    """
    M, WW, C = feat_f0.shape
    W = int(round(math.sqrt(WW)))
    scale = data['hw0_i'][0] / data['hw0_f'][0]

    if M == 0:   # eval-only early exit (mirrors the PyTorch module)
        return {'expec_f': jnp.zeros((0, 3), jnp.float32),
                'mkpts0_f': data['mkpts0_c'], 'mkpts1_f': data['mkpts1_c']}

    expec_f = fine_matching_pallas(feat_f0, feat_f1)             # [M, 3]
    coords_normalized = expec_f[:, :2]                           # [M, 2]

    # get_fine_match (no 'scale0' key -> scalar scale)
    n = data['mconf'].shape[0]
    mkpts0_f = data['mkpts0_c']
    mkpts1_f = data['mkpts1_c'] + (coords_normalized * (W // 2) * scale)[:n]
    return {'expec_f': expec_f, 'mkpts0_f': mkpts0_f, 'mkpts1_f': mkpts1_f}


# ---------------------------------------------------------------------------
# Pure-JAX reference (mirrors the PyTorch math) and self-test
# ---------------------------------------------------------------------------
def _reference_jax(feat_f0, feat_f1):
    M, WW, C = feat_f0.shape
    W = int(round(math.sqrt(WW)))
    f0p = feat_f0[:, WW // 2, :].astype(jnp.float32)
    f1 = feat_f1.astype(jnp.float32)
    sim = jnp.einsum('mc,mrc->mr', f0p, f1, precision=lax.Precision.HIGHEST)
    heat = jax.nn.softmax(sim / math.sqrt(C), axis=1)
    idx = jnp.arange(WW)
    inv = 2.0 / (W - 1) if W > 1 else 0.0
    gx = (idx % W).astype(jnp.float32) * inv - 1.0
    gy = (idx // W).astype(jnp.float32) * inv - 1.0
    ex = jnp.sum(heat * gx, axis=1)
    ey = jnp.sum(heat * gy, axis=1)
    vx = jnp.sum(heat * gx * gx, axis=1) - ex * ex
    vy = jnp.sum(heat * gy * gy, axis=1) - ey * ey
    std = jnp.sqrt(jnp.maximum(vx, 1e-10)) + jnp.sqrt(jnp.maximum(vy, 1e-10))
    return jnp.stack([ex, ey, std], axis=1)


if __name__ == "__main__":
    key = jax.random.PRNGKey(0)
    k0, k1, k2, k3, k4, k5, k6 = jax.random.split(key, 7)

    # --- Test 1: f32 path, ragged 2-step grid ------------------------------
    M, W, C = 10, 8, 32          # WW = 64
    WW = W * W
    feat_f0 = jax.random.normal(k0, (M, WW, C), dtype=jnp.float32)
    feat_f1 = jax.random.normal(k1, (M, WW, C), dtype=jnp.float32)

    data = {
        'hw0_i': (640.0, 480.0),   # original image size
        'hw0_f': (320.0, 240.0),   # fine feature map size -> scale = 2.0
        'mkpts0_c': jax.random.uniform(k2, (M, 2), dtype=jnp.float32) * 640.0,
        'mkpts1_c': jax.random.uniform(k3, (M, 2), dtype=jnp.float32) * 640.0,
        'mconf': jax.random.uniform(k4, (M,), dtype=jnp.float32),
    }

    out = fine_matching_forward(feat_f0, feat_f1, data)
    jax.block_until_ready(out['expec_f'])
    jax.block_until_ready(out['mkpts1_f'])

    ref = _reference_jax(feat_f0, feat_f1)
    assert jnp.allclose(out['expec_f'], ref, rtol=5e-3, atol=5e-3), "f32 mismatch"
    assert out['mkpts0_f'].shape == (M, 2) and out['mkpts1_f'].shape == (M, 2)

    # --- Test 2: bf16 path (input dtype preserved through the kernel) ------
    f0_bf = feat_f0.astype(jnp.bfloat16)
    f1_bf = feat_f1.astype(jnp.bfloat16)
    out_bf = fine_matching_pallas(f0_bf, f1_bf)
    jax.block_until_ready(out_bf)
    ref_bf = _reference_jax(f0_bf, f1_bf)
    assert jnp.allclose(out_bf, ref_bf, rtol=3e-2, atol=3e-2), "bf16 mismatch"

    # --- Test 3: LoFTR-like window (W=5), multi-step even grid -------------
    M2, W2, C2 = 300, 5, 64
    WW2 = W2 * W2
    f0_2 = jax.random.normal(k5, (M2, WW2, C2), dtype=jnp.float32)
    f1_2 = jax.random.normal(k6, (M2, WW2, C2), dtype=jnp.float32)
    out2 = fine_matching_pallas(f0_2, f1_2)
    jax.block_until_ready(out2)
    ref2 = _reference_jax(f0_2, f1_2)
    assert jnp.allclose(out2, ref2, rtol=5e-3, atol=5e-3), "W=5 mismatch"

    print("KERNEL_OK")
</pallas_src>

<mosaic_0001>
module attributes {stable_mosaic.version = 11 : i64} {
  func.func @_fine_matching_kernel(%arg0: i32, %arg1: memref<8x32xf32, #tpu.memory_space<vmem>>, %arg2: memref<8x2048xf32, #tpu.memory_space<vmem>>, %arg3: memref<2048x64xf32, #tpu.memory_space<vmem>>, %arg4: memref<64x8xf32, #tpu.memory_space<vmem>>, %arg5: memref<8x3xf32, #tpu.memory_space<vmem>>) attributes {dimension_semantics = [#tpu.dimension_semantics<parallel>], iteration_bounds = array<i64: 2>, scalar_prefetch = 0 : i64, scratch_operands = 0 : i64, tpu.core_type = #tpu.core_type<tc>, window_params = [{transform_indices = @transform_0, window_bounds = array<i64: 8, 32>}, {transform_indices = @transform_1, window_bounds = array<i64: 8, 2048>}, {pipeline_mode = #tpu.pipeline_mode<synchronous>, transform_indices = @transform_2, window_bounds = array<i64: 2048, 64>}, {pipeline_mode = #tpu.pipeline_mode<synchronous>, transform_indices = @transform_3, window_bounds = array<i64: 64, 8>}, {transform_indices = @transform_4, window_bounds = array<i64: 8, 3>}]} {
    %c0 = arith.constant 0 : index
    %c0_0 = arith.constant 0 : index
    %0 = vector.load %arg1[%c0, %c0_0] : memref<8x32xf32, #tpu.memory_space<vmem>>, vector<8x32xf32>
    %c0_1 = arith.constant 0 : index
    %c0_2 = arith.constant 0 : index
    %1 = vector.load %arg2[%c0_1, %c0_2] : memref<8x2048xf32, #tpu.memory_space<vmem>>, vector<8x2048xf32>
    %2 = tpu.concatenate %0, %0, %0, %0, %0, %0, %0, %0, %0, %0, %0, %0, %0, %0, %0, %0 in 1 : vector<8x32xf32>, vector<8x32xf32>, vector<8x32xf32>, vector<8x32xf32>, vector<8x32xf32>, vector<8x32xf32>, vector<8x32xf32>, vector<8x32xf32>, vector<8x32xf32>, vector<8x32xf32>, vector<8x32xf32>, vector<8x32xf32>, vector<8x32xf32>, vector<8x32xf32>, vector<8x32xf32>, vector<8x32xf32> -> vector<8x512xf32>
    %3 = tpu.concatenate %0, %0, %0, %0, %0, %0, %0, %0, %0, %0, %0, %0, %0, %0, %0, %0 in 1 : vector<8x32xf32>, vector<8x32xf32>, vector<8x32xf32>, vector<8x32xf32>, vector<8x32xf32>, vector<8x32xf32>, vector<8x32xf32>, vector<8x32xf32>, vector<8x32xf32>, vector<8x32xf32>, vector<8x32xf32>, vector<8x32xf32>, vector<8x32xf32>, vector<8x32xf32>, vector<8x32xf32>, vector<8x32xf32> -> vector<8x512xf32>
    %4 = tpu.concatenate %0, %0, %0, %0, %0, %0, %0, %0, %0, %0, %0, %0, %0, %0, %0, %0 in 1 : vector<8x32xf32>, vector<8x32xf32>, vector<8x32xf32>, vector<8x32xf32>, vector<8x32xf32>, vector<8x32xf32>, vector<8x32xf32>, vector<8x32xf32>, vector<8x32xf32>, vector<8x32xf32>, vector<8x32xf32>, vector<8x32xf32>, vector<8x32xf32>, vector<8x32xf32>, vector<8x32xf32>, vector<8x32xf32> -> vector<8x512xf32>
    %5 = tpu.concatenate %0, %0, %0, %0, %0, %0, %0, %0, %0, %0, %0, %0, %0, %0, %0, %0 in 1 : vector<8x32xf32>, vector<8x32xf32>, vector<8x32xf32>, vector<8x32xf32>, vector<8x32xf32>, vector<8x32xf32>, vector<8x32xf32>, vector<8x32xf32>, vector<8x32xf32>, vector<8x32xf32>, vector<8x32xf32>, vector<8x32xf32>, vector<8x32xf32>, vector<8x32xf32>, vector<8x32xf32>, vector<8x32xf32> -> vector<8x512xf32>
    %6 = tpu.concatenate %2, %3, %4, %5 in 1 : vector<8x512xf32>, vector<8x512xf32>, vector<8x512xf32>, vector<8x512xf32> -> vector<8x2048xf32>
    %7 = arith.mulf %1, %6 : vector<8x2048xf32>
    %c0_3 = arith.constant 0 : index
    %c0_4 = arith.constant 0 : index
    %8 = vector.load %arg3[%c0_3, %c0_4] : memref<2048x64xf32, #tpu.memory_space<vmem>>, vector<2048x64xf32>
    %cst = arith.constant dense<0.000000e+00> : vector<8x64xf32>
    %9 = tpu.matmul %7, %8, %cst {dimension_numbers = #tpu.dot_dimension_numbers<[1], [0], [0], [1], [0, 0, 1, 1], [], []>} : vector<8x2048xf32>, vector<2048x64xf32>, vector<8x64xf32> -> vector<8x64xf32>
    %cst_5 = arith.constant 0.176776692 : f32
    %10 = vector.broadcast %cst_5 : f32 to vector<8x64xf32>
    %11 = arith.mulf %9, %10 : vector<8x64xf32>
    %cst_6 = arith.constant dense<0xFF800000> : vector<8xf32>
    %12 = vector.multi_reduction <maximumf>, %11, %cst_6 [1] : vector<8x64xf32> to vector<8xf32>
    %13 = vector.shape_cast %12 : vector<8xf32> to vector<8x1xf32>
    %14 = vector.broadcast %13 : vector<8x1xf32> to vector<8x64xf32>
    %15 = arith.subf %11, %14 : vector<8x64xf32>
    %16 = math.exp %15 : vector<8x64xf32>
    %c0_7 = arith.constant 0 : index
    %c0_8 = arith.constant 0 : index
    %17 = vector.load %arg4[%c0_7, %c0_8] : memref<64x8xf32, #tpu.memory_space<vmem>>, vector<64x8xf32>
    %cst_9 = arith.constant dense<0.000000e+00> : vector<8x8xf32>
    %18 = tpu.matmul %16, %17, %cst_9 {dimension_numbers = #tpu.dot_dimension_numbers<[1], [0], [0], [1], [0, 0, 1, 1], [], []>, precision = #tpu.contract_precision<fp32>} : vector<8x64xf32>, vector<64x8xf32>, vector<8x8xf32> -> vector<8x8xf32>
    %19 = vector.extract_strided_slice %18 {offsets = [0, 0], sizes = [8, 1], strides = [1, 1]} : vector<8x8xf32> to vector<8x1xf32>
    %cst_10 = arith.constant 1.000000e+00 : f32
    %20 = vector.broadcast %cst_10 : f32 to vector<8x1xf32>
    %21 = arith.divf %20, %19 : vector<8x1xf32>
    %22 = vector.extract_strided_slice %18 {offsets = [0, 1], sizes = [8, 1], strides = [1, 1]} : vector<8x8xf32> to vector<8x1xf32>
    %23 = arith.mulf %22, %21 : vector<8x1xf32>
    %24 = vector.extract_strided_slice %18 {offsets = [0, 2], sizes = [8, 1], strides = [1, 1]} : vector<8x8xf32> to vector<8x1xf32>
    %25 = arith.mulf %24, %21 : vector<8x1xf32>
    %26 = vector.extract_strided_slice %18 {offsets = [0, 3], sizes = [8, 1], strides = [1, 1]} : vector<8x8xf32> to vector<8x1xf32>
    %27 = arith.mulf %26, %21 : vector<8x1xf32>
    %28 = vector.extract_strided_slice %18 {offsets = [0, 4], sizes = [8, 1], strides = [1, 1]} : vector<8x8xf32> to vector<8x1xf32>
    %29 = arith.mulf %28, %21 : vector<8x1xf32>
    %cst_11 = arith.constant 0.285714298 : f32
    %30 = vector.broadcast %cst_11 : f32 to vector<8x1xf32>
    %31 = arith.mulf %23, %30 : vector<8x1xf32>
    %cst_12 = arith.constant 0.000000e+00 : f32
    %32 = vector.broadcast %cst_12 : f32 to vector<8x1xf32>
    %33 = arith.addf %31, %32 : vector<8x1xf32>
    %cst_13 = arith.constant 0.285714298 : f32
    %34 = vector.broadcast %cst_13 : f32 to vector<8x1xf32>
    %35 = arith.mulf %25, %34 : vector<8x1xf32>
    %cst_14 = arith.constant 0.000000e+00 : f32
    %36 = vector.broadcast %cst_14 : f32 to vector<8x1xf32>
    %37 = arith.addf %35, %36 : vector<8x1xf32>
    %38 = arith.mulf %23, %23 : vector<8x1xf32>
    %39 = arith.subf %27, %38 : vector<8x1xf32>
    %cst_15 = arith.constant 0.0816326513 : f32
    %40 = vector.broadcast %cst_15 : f32 to vector<8x1xf32>
    %41 = arith.mulf %39, %40 : vector<8x1xf32>
    %42 = arith.mulf %25, %25 : vector<8x1xf32>
    %43 = arith.subf %29, %42 : vector<8x1xf32>
    %cst_16 = arith.constant 0.0816326513 : f32
    %44 = vector.broadcast %cst_16 : f32 to vector<8x1xf32>
    %45 = arith.mulf %43, %44 : vector<8x1xf32>
    %cst_17 = arith.constant 1.000000e-10 : f32
    %46 = vector.broadcast %cst_17 : f32 to vector<8x1xf32>
    %47 = arith.maximumf %41, %46 : vector<8x1xf32>
    %48 = math.sqrt %47 : vector<8x1xf32>
    %cst_18 = arith.constant 1.000000e-10 : f32
    %49 = vector.broadcast %cst_18 : f32 to vector<8x1xf32>
    %50 = arith.maximumf %45, %49 : vector<8x1xf32>
    %51 = math.sqrt %50 : vector<8x1xf32>
    %52 = arith.addf %48, %51 : vector<8x1xf32>
    %53 = tpu.concatenate %33, %37, %52 in 1 : vector<8x1xf32>, vector<8x1xf32>, vector<8x1xf32> -> vector<8x3xf32>
    %c0_19 = arith.constant 0 : index
    %c0_20 = arith.constant 0 : index
    %54 = vector.load %arg5[%c0_19, %c0_20] : memref<8x3xf32, #tpu.memory_space<vmem>>, vector<8x3xf32>
    tpu.vector_store %arg5[%c0_19, %c0_20], %53 {strides = array<i32>} : memref<8x3xf32, #tpu.memory_space<vmem>>, vector<8x3xf32>,
    return
  }
  func.func @transform_0(%arg0: i32) -> (i32, i32) {
    %c0_i32 = arith.constant 0 : i32
    %c0_i32_0 = arith.constant 0 : i32
    return %arg0, %c0_i32 : i32, i32
  }
  func.func @transform_1(%arg0: i32) -> (i32, i32) {
    %c0_i32 = arith.constant 0 : i32
    %c0_i32_0 = arith.constant 0 : i32
    return %arg0, %c0_i32 : i32, i32
  }
  func.func @transform_2(%arg0: i32) -> (i32, i32) {
    %c0_i32 = arith.constant 0 : i32
    %c0_i32_0 = arith.constant 0 : i32
    %c0_i32_1 = arith.constant 0 : i32
    return %c0_i32, %c0_i32_0 : i32, i32
  }
  func.func @transform_3(%arg0: i32) -> (i32, i32) {
    %c0_i32 = arith.constant 0 : i32
    %c0_i32_0 = arith.constant 0 : i32
    %c0_i32_1 = arith.constant 0 : i32
    return %c0_i32, %c0_i32_0 : i32, i32
  }
  func.func @transform_4(%arg0: i32) -> (i32, i32) {
    %c0_i32 = arith.constant 0 : i32
    %c0_i32_0 = arith.constant 0 : i32
    return %arg0, %c0_i32 : i32, i32
  }
}

</mosaic_0001>

<bundles_post_ra>
// kernel: fine_matching_pallas.1
= control target key start
LH: loop header
LB: loop body
LE: loop exit
PB: predicated region body
PF: predicated region fallthrough
CT: control target
= control target key end

     0   :  { %s2303_s15 = smov 0   ;;  %s3376_s0 = inlined_call_operand.vmem [shape: f32[10,32], index: 0, kind: input, shape index: {}]   ;;  %s3377_s1 = inlined_call_operand.vmem [shape: f32[10,2048], index: 1, kind: input, shape index: {}]   ;;  %s3378_s2 = inlined_call_operand.vmem [shape: f32[2048,64], index: 2, kind: input, shape index: {}]   ;;  %s3379_s3 = inlined_call_operand.vmem [shape: f32[64,8], index: 3, kind: input, shape index: {}]   ;;  %s3380_s4 = inlined_call_operand.vmem [shape: f32[10,3], index: 4, kind: output, shape index: {}]  }
   0x1 LB: > { %s1774_s16 = sadd.s32 4294967295, %s2266_s15   ;;  %p1778_p0 = scmp.ge.s32.totalorder %s2266_s15, 1  ;;  %s2266_s15 = sphi %s2303_s15, %s14_s15  }
   0x2   : > { %p171_p1 = scmp.lt.s32.totalorder %s2266_s15, 3 }
   0x4   : > { %p172_p2 = pnand %p1778_p0, %p171_p1 }
   0x5   : > { %p200_p3 = scmp.lt.s32.totalorder (!%p172_p2), %s1774_s16, 1  ;;  %s2268_s29 = smov (!%p172_p2), 32  }
   0x6   : > { %175 = sbr.rel (%p172_p2) target bundleno = 1352 (0x548), region = 36  ;;  %s2269_s30 = smov (!%p172_p2), 96  }
   0x7   : > { %s2270_s22 = smov (!%p172_p2), 64   ;;  %s2273_s5 = smov (!%p172_p2), 2  }
   0x8   : > { %s2274_s6 = smov (!%p172_p2), 1   ;;  %s2275_s7 = smov (!%p172_p2), 4  }
   0x9   : > { %s2276_s8 = smov (!%p172_p2), 3   ;;  %s2277_s9 = smov (!%p172_p2), 127  }
   0xb   : > { %v293_v0 = vld [vmem:[%s3378_s2 + $0xf8] sm:$0xff]  ;;  %v292_v4 = vld [vmem:[%s3378_s2 + $0xf0] sm:$0xff]  ;;  %s3382_s16 = smov (!%p200_p3, %s1774_s16), 1  ;;  %v291_v8 = vld [vmem:[%s3378_s2 + $0xe8] sm:$0xff]  ;;  %vm240_vm0 = vcmask 261120   ;;  %vm242_vm1 = vcmask 523264  }
   0xc   : > { %v325_v1 = vld [vmem:[%s3378_s2 + $0x1f8] sm:$0xff]  ;;  %1786 = vmatprep.subr.mxu0 %v293_v0  ;;  %v324_v5 = vld [vmem:[%s3378_s2 + $0x1f0] sm:$0xff]  ;;  %v323_v9 = vld [vmem:[%s3378_s2 + $0x1e8] sm:$0xff]  ;;  %s1779_s17 = sshll.u32 %s3382_s16, 3  ;;  %s1785_s14 = sshll.u32 %s3382_s16, 7  ;;  %vm244_vm2 = vcmask 785408  }
   0xd   : > { %v277_v2 = vld [vmem:[%s3378_s2 + $0x78] sm:$0xff]  ;;  %1821 = vmatprep.subr.mxu1 %v325_v1  ;;  %v276_v6 = vld [vmem:[%s3378_s2 + $0x70] sm:$0xff]  ;;  %v275_v10 = vld [vmem:[%s3378_s2 + $0x68] sm:$0xff]  ;;  %s203_s20 = scalar_lea.vmem %s3376_s0, %s1779_s17  ;;  %vm2272_vm3 = vmmov 0   ;;  %vm1703_vm8 = vcmask 7168   ;;  %vm1705_vm9 = vcmask 15360   ;;  %s212_s12 = scalar_lea.vmem %s3380_s4, %s1779_s17 }
   0xe   : > { %v309_v3 = vld [vmem:[%s3378_s2 + $0x178] sm:$0xff]  ;;  %1787 = vmatpush3.msra.mxu0 %v277_v2  ;;  %v308_v7 = vld [vmem:[%s3378_s2 + $0x170] sm:$0xff]  ;;  %v307_v11 = vld [vmem:[%s3378_s2 + $0x168] sm:$0xff]  ;;  %vm1707_vm10 = vcmask 23552  }
   0xf   : > { %1822 = vmatpush3.msra.mxu1 %v309_v3  ;;  %1788 = vmatprep.subr.mxu0 %v292_v4  ;;  %v290_v12 = vld [vmem:[%s3378_s2 + $0xe0] sm:$0xff]  ;;  %v289_v17 = vld [vmem:[%s3378_s2 + $0xd8] sm:$0xff]  ;;  %v288_v21 = vld [vmem:[%s3378_s2 + $0xd0] sm:$0xff] }
  0x10   : > { %1823 = vmatprep.subr.mxu1 %v324_v5  ;;  %1789 = vmatpush3.msra.mxu0 %v276_v6  ;;  %v322_v13 = vld [vmem:[%s3378_s2 + $0x1e0] sm:$0xff]  ;;  %v321_v18 = vld [vmem:[%s3378_s2 + $0x1d8] sm:$0xff]  ;;  %v320_v22 = vld [vmem:[%s3378_s2 + $0x1d0] sm:$0xff] }
  0x11   : > { %1824 = vmatpush3.msra.mxu1 %v308_v7  ;;  %1790 = vmatprep.subr.mxu0 %v291_v8  ;;  %v2361_v14 = vld [vmem:[%s203_s20] sm:$0xff]  ;;  %v273_v19 = vld [vmem:[%s3378_s2 + $0x58] sm:$0xff]  ;;  %v272_v23 = vld [vmem:[%s3378_s2 + $0x50] sm:$0xff]  ;;  %s2526_s20 = scalar_lea.vmem %s3377_s1, %s1785_s14 }
  0x12   : > { %1825 = vmatprep.subr.mxu1 %v323_v9  ;;  %1791 = vmatpush3.msra.mxu0 %v275_v10  ;;  %v274_v15 = vld [vmem:[%s3378_s2 + $0x60] sm:$0xff]  ;;  %v305_v20 = vld [vmem:[%s3378_s2 + $0x158] sm:$0xff]  ;;  %v304_v24 = vld [vmem:[%s3378_s2 + $0x150] sm:$0xff] }
  0x13   : > { %1826 = vmatpush3.msra.mxu1 %v307_v11  ;;  %v306_v16 = vld [vmem:[%s3378_s2 + $0x160] sm:$0xff]  ;;  %231 = vrot.lane.b32.xlu0 %v2361_v14, %s2268_s29  ;;  %v287_v25 = vld [vmem:[%s3378_s2 + $0xc8] sm:$0xff]  ;;  %v285_v33 = vld [vmem:[%s3378_s2 + $0xb8] sm:$0xff] }
  0x14   : > { %237 = vrot.lane.b32.xlu1 %v2361_v14, %s2269_s30  ;;  %1792 = vmatprep.subr.mxu0 %v290_v12  ;;  %v319_v26 = vld [vmem:[%s3378_s2 + $0x1c8] sm:$0xff]  ;;  %v286_v29 = vld [vmem:[%s3378_s2 + $0xc0] sm:$0xff]  ;;  %v317_v34 = vld [vmem:[%s3378_s2 + $0x1b8] sm:$0xff] }
  0x15   : > { %1827 = vmatprep.subr.mxu1 %v322_v13  ;;  %1793 = vmatpush3.msra.mxu0 %v274_v15  ;;  %v271_v27 = vld [vmem:[%s3378_s2 + $0x48] sm:$0xff]  ;;  %v318_v30 = vld [vmem:[%s3378_s2 + $0x1c0] sm:$0xff]  ;;  %v269_v35 = vld [vmem:[%s3378_s2 + $0x38] sm:$0xff] }
  0x16   : > { %1828 = vmatpush3.msra.mxu1 %v306_v16  ;;  %1794 = vmatprep.subr.mxu0 %v289_v17  ;;  %v303_v28 = vld [vmem:[%s3378_s2 + $0x148] sm:$0xff]  ;;  %v270_v31 = vld [vmem:[%s3378_s2 + $0x40] sm:$0xff]  ;;  %v301_v36 = vld [vmem:[%s3378_s2 + $0x138] sm:$0xff] }
  0x17   : > { %1829 = vmatprep.subr.mxu1 %v321_v18  ;;  %234 = vrot.lane.b32.xlu0 %v2361_v14, %s2270_s22  ;;  %v302_v32 = vld [vmem:[%s3378_s2 + $0x140] sm:$0xff]  ;;  %v284_v37 = vld [vmem:[%s3378_s2 + $0xb0] sm:$0xff]  ;;  %v283_v41 = vld [vmem:[%s3378_s2 + $0xa8] sm:$0xff] }
  0x18   : > { %1795 = vmatpush3.msra.mxu0 %v273_v19  ;;  %1830 = vmatpush3.msra.mxu1 %v305_v20  ;;  %v316_v38 = vld [vmem:[%s3378_s2 + $0x1b0] sm:$0xff]  ;;  %v315_v42 = vld [vmem:[%s3378_s2 + $0x1a8] sm:$0xff]  ;;  %v282_v45 = vld [vmem:[%s3378_s2 + $0xa0] sm:$0xff] }
  0x19   : > { %1796 = vmatprep.subr.mxu0 %v288_v21  ;;  %1831 = vmatprep.subr.mxu1 %v320_v22  ;;  %v268_v39 = vld [vmem:[%s3378_s2 + $0x30] sm:$0xff]  ;;  %v267_v43 = vld [vmem:[%s3378_s2 + $0x28] sm:$0xff]  ;;  %v314_v46 = vld [vmem:[%s3378_s2 + $0x1a0] sm:$0xff] }
  0x1a   : > { %1797 = vmatpush3.msra.mxu0 %v272_v23  ;;  %1832 = vmatpush3.msra.mxu1 %v304_v24  ;;  %v300_v40 = vld [vmem:[%s3378_s2 + $0x130] sm:$0xff]  ;;  %v299_v44 = vld [vmem:[%s3378_s2 + $0x128] sm:$0xff]  ;;  %v266_v47 = vld [vmem:[%s3378_s2 + $0x20] sm:$0xff] }
  0x1b   : > { %1798 = vmatprep.subr.mxu0 %v287_v25  ;;  %1833 = vmatprep.subr.mxu1 %v319_v26  ;;  %v298_v48 = vld [vmem:[%s3378_s2 + $0x120] sm:$0xff]  ;;  %v281_v49 = vld [vmem:[%s3378_s2 + $0x98] sm:$0xff]  ;;  %v280_v53 = vld [vmem:[%s3378_s2 + $0x90] sm:$0xff] }
  0x1c   : > { %1799 = vmatpush3.msra.mxu0 %v271_v27  ;;  %1834 = vmatpush3.msra.mxu1 %v303_v28  ;;  %v313_v50 = vld [vmem:[%s3378_s2 + $0x198] sm:$0xff]  ;;  %v312_v54 = vld [vmem:[%s3378_s2 + $0x190] sm:$0xff]  ;;  %v279_v57 = vld [vmem:[%s3378_s2 + $0x88] sm:$0xff] }
  0x1d   : > { %1800 = vmatprep.subr.mxu0 %v286_v29  ;;  %1835 = vmatprep.subr.mxu1 %v318_v30  ;;  %v265_v51 = vld [vmem:[%s3378_s2 + $0x18] sm:$0xff]  ;;  %v264_v55 = vld [vmem:[%s3378_s2 + $0x10] sm:$0xff]  ;;  %v311_v58 = vld [vmem:[%s3378_s2 + $0x188] sm:$0xff] }
  0x1e   : > { %1801 = vmatpush3.msra.mxu0 %v270_v31  ;;  %1836 = vmatpush3.msra.mxu1 %v302_v32  ;;  %v297_v52 = vld [vmem:[%s3378_s2 + $0x118] sm:$0xff]  ;;  %v296_v56 = vld [vmem:[%s3378_s2 + $0x110] sm:$0xff]  ;;  %v263_v59 = vld [vmem:[%s3378_s2 + $0x8] sm:$0xff] }
  0x1f   : > { %1802 = vmatprep.subr.mxu0 %v285_v33  ;;  %1837 = vmatprep.subr.mxu1 %v317_v34  ;;  %v295_v60 = vld [vmem:[%s3378_s2 + $0x108] sm:$0xff]  ;;  %v278_v61 = vld [vmem:[%s3378_s2 + $0x80] sm:$0xff]  ;;  %v357_v1 = vld [vmem:[%s3378_s2 + $0x2f8] sm:$0xff] }
  0x20   : > { %1803 = vmatpush3.msra.mxu0 %v269_v35  ;;  %1838 = vmatpush3.msra.mxu1 %v301_v36  ;;  %v310_v62 = vld [vmem:[%s3378_s2 + $0x180] sm:$0xff]  ;;  %v389_v2 = vld [vmem:[%s3378_s2 + $0x3f8] sm:$0xff]  ;;  %v215_v5 = vld [vmem:[%s2526_s20 + $0x8] sm:$0xff] }
  0x21   : > { %1804 = vmatprep.subr.mxu0 %v284_v37  ;;  %1839 = vmatprep.subr.mxu1 %v316_v38  ;;  %v262_v63 = vld [vmem:[%s3378_s2] sm:$0xff]  ;;  %v217_v8 = vld [vmem:[%s2526_s20 + $0x18] sm:$0xff]  ;;  %v216_v10 = vld [vmem:[%s2526_s20 + $0x10] sm:$0xff] }
  0x22   : > { %1805 = vmatpush3.msra.mxu0 %v268_v39  ;;  %1840 = vmatpush3.msra.mxu1 %v300_v40  ;;  %v294_v0 = vld [vmem:[%s3378_s2 + $0x100] sm:$0xff]  ;;  %v341_v13 = vld [vmem:[%s3378_s2 + $0x278] sm:$0xff]  ;;  %v219_v15 = vld [vmem:[%s2526_s20 + $0x28] sm:$0xff] }
  0x23   : > { %1806 = vmatprep.subr.mxu0 %v283_v41  ;;  %1841 = vmatprep.subr.mxu1 %v315_v42  ;;  %v214_v9 = vld [vmem:[%s2526_s20] sm:$0xff]  ;;  %v224_v21 = vld [vmem:[%s2526_s20 + $0x50] sm:$0xff]  ;;  %v227_v22 = vld [vmem:[%s2526_s20 + $0x68] sm:$0xff] }
  0x24   : > { %1807 = vmatpush3.msra.mxu0 %v267_v43  ;;  %1842 = vmatpush3.msra.mxu1 %v299_v44  ;;  %v222_v16 = vld [vmem:[%s2526_s20 + $0x40] sm:$0xff]  ;;  %v229_v23 = vld [vmem:[%s2526_s20 + $0x78] sm:$0xff]  ;;  %v228_v26 = vld [vmem:[%s2526_s20 + $0x70] sm:$0xff] }
  0x25   : > { %1808 = vmatprep.subr.mxu0 %v282_v45  ;;  %1843 = vmatprep.subr.mxu1 %v314_v46  ;;  %v221_v24 = vld [vmem:[%s2526_s20 + $0x38] sm:$0xff]  ;;  %v226_v25 = vld [vmem:[%s2526_s20 + $0x60] sm:$0xff]  ;;  %v356_v27 = vld [vmem:[%s3378_s2 + $0x2f0] sm:$0xff] }
  0x26   : > { %1809 = vmatpush3.msra.mxu0 %v266_v47  ;;  %1844 = vmatpush3.msra.mxu1 %v298_v48  ;;  %v388_v30 = vld [vmem:[%s3378_s2 + $0x3f0] sm:$0xff]  ;;  %v355_v39 = vld [vmem:[%s3378_s2 + $0x2e8] sm:$0xff]  ;;  %v354_v43 = vld [vmem:[%s3378_s2 + $0x2e0] sm:$0xff] }
  0x27   : > { %1810 = vmatprep.subr.mxu0 %v281_v49  ;;  %1845 = vmatprep.subr.mxu1 %v313_v50  ;;  %v340_v35 = vld [vmem:[%s3378_s2 + $0x270] sm:$0xff]  ;;  %v387_v40 = vld [vmem:[%s3378_s2 + $0x3e8] sm:$0xff]  ;;  %v386_v44 = vld [vmem:[%s3378_s2 + $0x3e0] sm:$0xff] }
  0x28   : > { %1811 = vmatpush3.msra.mxu0 %v265_v51  ;;  %1846 = vmatpush3.msra.mxu1 %v297_v52  ;;  %v372_v36 = vld [vmem:[%s3378_s2 + $0x370] sm:$0xff]  ;;  %v339_v41 = vld [vmem:[%s3378_s2 + $0x268] sm:$0xff]  ;;  %v338_v45 = vld [vmem:[%s3378_s2 + $0x260] sm:$0xff] }
  0x29   : > { %1812 = vmatprep.subr.mxu0 %v280_v53  ;;  %1847 = vmatprep.subr.mxu1 %v312_v54  ;;  %v371_v42 = vld [vmem:[%s3378_s2 + $0x368] sm:$0xff]  ;;  %v370_v46 = vld [vmem:[%s3378_s2 + $0x360] sm:$0xff]  ;;  %v353_v47 = vld [vmem:[%s3378_s2 + $0x2d8] sm:$0xff] }
  0x2a   : > { %1813 = vmatpush3.msra.mxu0 %v264_v55  ;;  %1848 = vmatpush3.msra.mxu1 %v296_v56  ;;  %v385_v48 = vld [vmem:[%s3378_s2 + $0x3d8] sm:$0xff]  ;;  %v352_v51 = vld [vmem:[%s3378_s2 + $0x2d0] sm:$0xff]  ;;  %v351_v55 = vld [vmem:[%s3378_s2 + $0x2c8] sm:$0xff] }
  0x2b   : > { %1814 = vmatprep.subr.mxu0 %v279_v57  ;;  %1849 = vmatprep.subr.mxu1 %v311_v58  ;;  %v337_v49 = vld [vmem:[%s3378_s2 + $0x258] sm:$0xff]  ;;  %v384_v52 = vld [vmem:[%s3378_s2 + $0x3d0] sm:$0xff]  ;;  %v383_v56 = vld [vmem:[%s3378_s2 + $0x3c8] sm:$0xff] }
  0x2c   : > { %1815 = vmatpush3.msra.mxu0 %v263_v59  ;;  %1850 = vmatpush3.msra.mxu1 %v295_v60  ;;  %v369_v50 = vld [vmem:[%s3378_s2 + $0x358] sm:$0xff]  ;;  %v336_v53 = vld [vmem:[%s3378_s2 + $0x250] sm:$0xff]  ;;  %v335_v57 = vld [vmem:[%s3378_s2 + $0x248] sm:$0xff] }
  0x2d   : > { %1816 = vmatprep.subr.mxu0 %v278_v61  ;;  %1851 = vmatprep.subr.mxu1 %v310_v62  ;;  %v368_v54 = vld [vmem:[%s3378_s2 + $0x350] sm:$0xff]  ;;  %v367_v58 = vld [vmem:[%s3378_s2 + $0x348] sm:$0xff]  ;;  %v350_v59 = vld [vmem:[%s3378_s2 + $0x2c0] sm:$0xff] }
  0x2e   : > { %1817 = vmatpush3.msra.mxu0 %v262_v63  ;;  %1852 = vmatpush3.msra.mxu1 %v294_v0  ;;  %v382_v60 = vld [vmem:[%s3378_s2 + $0x3c0] sm:$0xff]  ;;  %v349_v63 = vld [vmem:[%s3378_s2 + $0x2b8] sm:$0xff] }
  0x2f   : > { %1856 = vmatprep.subr.mxu0 %v357_v1  ;;  %1891 = vmatprep.subr.mxu1 %v389_v2  ;;  %v334_v61 = vld [vmem:[%s3378_s2 + $0x240] sm:$0xff]  ;;  %v381_v0 = vld [vmem:[%s3378_s2 + $0x3b8] sm:$0xff] }
  0x30   : > { %v366_v62 = vld [vmem:[%s3378_s2 + $0x340] sm:$0xff]  ;;  %v333_v1 = vld [vmem:[%s3378_s2 + $0x238] sm:$0xff] }
  0x31   : > { %v365_v2 = vld [vmem:[%s3378_s2 + $0x338] sm:$0xff] }
  0x85   : > { %v232_v3 = vpop.permute.xlu0 %231 }
  0x86   : > { %v238_v4 = vpop.permute.xlu1 %237  ;;  %v241_v6 = vsel %vm240_vm0, %v2361_v14, %v232_v3  ;;  %v373_v14 = vld [vmem:[%s3378_s2 + $0x378] sm:$0xff]  ;;  %v348_v3 = vld [vmem:[%s3378_s2 + $0x2b0] sm:$0xff] }
  0x89   : > { %v235_v7 = vpop.permute.xlu0 %234 }
  0x8a   : > { %v243_v11 = vsel %vm242_vm1, %v241_v6, %v235_v7  ;;  %v364_v6 = vld [vmem:[%s3378_s2 + $0x330] sm:$0xff]  ;;  %v347_v7 = vld [vmem:[%s3378_s2 + $0x2a8] sm:$0xff] }
  0x8b   : > { %v2534_v12 = vsel %vm244_vm2, %v243_v11, %v238_v4  ;;  %v380_v4 = vld [vmem:[%s3378_s2 + $0x3b0] sm:$0xff]  ;;  %v346_v11 = vld [vmem:[%s3378_s2 + $0x2a0] sm:$0xff] }
  0x8c   : > { %v247_v17 = vmul.f32 %v2534_v12, %v215_v5  ;;  %v249_v18 = vmul.f32 %v2534_v12, %v217_v8  ;;  %v246_v19 = vmul.f32 %v2534_v12, %v214_v9  ;;  %v248_v20 = vmul.f32 %v2534_v12, %v216_v10  ;;  %v332_v5 = vld [vmem:[%s3378_s2 + $0x230] sm:$0xff]  ;;  %v379_v8 = vld [vmem:[%s3378_s2 + $0x3a8] sm:$0xff] }
  0x8d   : > { %v251_v28 = vmul.f32 %v2534_v12, %v219_v15  ;;  %v2559_v29 = vmul.f32 %v2534_v12, %v222_v16  ;;  %v2565_v31 = vmul.f32 %v2534_v12, %v224_v21  ;;  %v2568_v32 = vmul.f32 %v2534_v12, %v227_v22  ;;  %v331_v9 = vld [vmem:[%s3378_s2 + $0x228] sm:$0xff]  ;;  %v362_v15 = vld [vmem:[%s3378_s2 + $0x320] sm:$0xff]  ;;  %v345_v16 = vld [vmem:[%s3378_s2 + $0x298] sm:$0xff] }
  0x8e   : > { %582 = vmatprep.mubr.f32.mxu0 %v247_v17  ;;  %652 = vmatprep.mubr.f32.mxu1 %v249_v18  ;;  %v2571_v33 = vmul.f32 %v2534_v12, %v229_v23  ;;  %v253_v34 = vmul.f32 %v2534_v12, %v221_v24  ;;  %v2581_v37 = vmul.f32 %v2534_v12, %v226_v25  ;;  %v363_v10 = vld [vmem:[%s3378_s2 + $0x328] sm:$0xff]  ;;  %v377_v17 = vld [vmem:[%s3378_s2 + $0x398] sm:$0xff]  ;;  %v376_v21 = vld [vmem:[%s3378_s2 + $0x390] sm:$0xff] }
  0x8f   : > { %583 = vmatmul.mubr.f32.vlgmr.msra.gmra.mxu0 %v246_v19  ;;  %653 = vmatmul.mubr.f32.vlgmr.msra.gmra.mxu1 %v248_v20  ;;  %v2584_v38 = vmul.f32 %v2534_v12, %v228_v26  ;;  %v329_v18 = vld [vmem:[%s3378_s2 + $0x218] sm:$0xff]  ;;  %v344_v20 = vld [vmem:[%s3378_s2 + $0x290] sm:$0xff]  ;;  %v343_v24 = vld [vmem:[%s3378_s2 + $0x288] sm:$0xff] }
  0x90   : > { %1857 = vmatpush3.msra.mxu0 %v341_v13  ;;  %1892 = vmatpush3.msra.mxu1 %v373_v14  ;;  %v378_v13 = vld [vmem:[%s3378_s2 + $0x3a0] sm:$0xff]  ;;  %v361_v19 = vld [vmem:[%s3378_s2 + $0x318] sm:$0xff]  ;;  %v328_v22 = vld [vmem:[%s3378_s2 + $0x210] sm:$0xff] }
  0x91   : > { %1858 = vmatprep.subr.mxu0 %v356_v27  ;;  %722 = vmatprep.mubr.f32.mxu0 %v251_v28  ;;  %v330_v14 = vld [vmem:[%s3378_s2 + $0x220] sm:$0xff]  ;;  %v360_v23 = vld [vmem:[%s3378_s2 + $0x310] sm:$0xff]  ;;  %v375_v25 = vld [vmem:[%s3378_s2 + $0x388] sm:$0xff] }
  0x92   : > { %1893 = vmatprep.subr.mxu1 %v388_v30  ;;  %792 = vmatprep.mubr.f32.mxu1 %v253_v34  ;;  %v327_v26 = vld [vmem:[%s3378_s2 + $0x208] sm:$0xff]  ;;  %v342_v28 = vld [vmem:[%s3378_s2 + $0x280] sm:$0xff] }
  0x93   : > { %1859 = vmatpush3.msra.mxu0 %v340_v35  ;;  %1894 = vmatpush3.msra.mxu1 %v372_v36  ;;  %v359_v27 = vld [vmem:[%s3378_s2 + $0x308] sm:$0xff]  ;;  %v374_v30 = vld [vmem:[%s3378_s2 + $0x380] sm:$0xff]  ;;  %v220_v35 = vld [vmem:[%s2526_s20 + $0x30] sm:$0xff] }
  0x94   : > { %1860 = vmatprep.subr.mxu0 %v355_v39  ;;  %1895 = vmatprep.subr.mxu1 %v387_v40  ;;  %v218_v34 = vld [vmem:[%s2526_s20 + $0x20] sm:$0xff]  ;;  %v223_v40 = vld [vmem:[%s2526_s20 + $0x48] sm:$0xff] }
  0x95   : > { %1861 = vmatpush3.msra.mxu0 %v339_v41  ;;  %1896 = vmatpush3.msra.mxu1 %v371_v42  ;;  %v326_v36 = vld [vmem:[%s3378_s2 + $0x200] sm:$0xff]  ;;  %v250_v41 = vmul.f32 %v2534_v12, %v218_v34  ;;  %v252_v42 = vmul.f32 %v2534_v12, %v220_v35  ;;  %v409_v34 = vld [vmem:[%s3378_s2 + $0x498] sm:$0xff] }
  0x96   : > { %1862 = vmatprep.subr.mxu0 %v354_v43  ;;  %1897 = vmatprep.subr.mxu1 %v386_v44  ;;  %v358_v39 = vld [vmem:[%s3378_s2 + $0x300] sm:$0xff]  ;;  %v421_v43 = vld [vmem:[%s3378_s2 + $0x4f8] sm:$0xff] }
  0x97   : > { %1863 = vmatpush3.msra.mxu0 %v338_v45  ;;  %1898 = vmatpush3.msra.mxu1 %v370_v46  ;;  %v453_v44 = vld [vmem:[%s3378_s2 + $0x5f8] sm:$0xff] }
  0x98   : > { %1864 = vmatprep.subr.mxu0 %v353_v47  ;;  %1899 = vmatprep.subr.mxu1 %v385_v48  ;;  %v225_v45 = vld [vmem:[%s2526_s20 + $0x58] sm:$0xff]  ;;  %v255_v47 = vmul.f32 %v2534_v12, %v223_v40  ;;  %v408_v40 = vld [vmem:[%s3378_s2 + $0x490] sm:$0xff] }
  0x99   : > { %1865 = vmatpush3.msra.mxu0 %v337_v49  ;;  %1900 = vmatpush3.msra.mxu1 %v369_v50  ;;  %v405_v46 = vld [vmem:[%s3378_s2 + $0x478] sm:$0xff]  ;;  %v257_v49 = vmul.f32 %v2534_v12, %v225_v45  ;;  %v420_v50 = vld [vmem:[%s3378_s2 + $0x4f0] sm:$0xff]  ;;  %v419_v12 = vld [vmem:[%s3378_s2 + $0x4e8] sm:$0xff] }
  0x9a   : > { %1866 = vmatprep.subr.mxu0 %v352_v51  ;;  %1901 = vmatprep.subr.mxu1 %v384_v52  ;;  %v437_v48 = vld [vmem:[%s3378_s2 + $0x578] sm:$0xff]  ;;  %v452_v51 = vld [vmem:[%s3378_s2 + $0x5f0] sm:$0xff]  ;;  %v439_v45 = vld [vmem:[%s3378_s2 + $0x588] sm:$0xff] }
  0x9b   : > { %1867 = vmatpush3.msra.mxu0 %v336_v53  ;;  %1902 = vmatpush3.msra.mxu1 %v368_v54  ;;  %v404_v52 = vld [vmem:[%s3378_s2 + $0x470] sm:$0xff]  ;;  %v451_v54 = vld [vmem:[%s3378_s2 + $0x5e8] sm:$0xff]  ;;  %v441_v35 = vld [vmem:[%s3378_s2 + $0x598] sm:$0xff] }
  0x9c   : > { %1868 = vmatprep.subr.mxu0 %v351_v55  ;;  %1903 = vmatprep.subr.mxu1 %v383_v56  ;;  %v436_v53 = vld [vmem:[%s3378_s2 + $0x570] sm:$0xff]  ;;  %v403_v55 = vld [vmem:[%s3378_s2 + $0x468] sm:$0xff] }
  0x9d   : > { %1869 = vmatpush3.msra.mxu0 %v335_v57  ;;  %1904 = vmatpush3.msra.mxu1 %v367_v58  ;;  %v435_v56 = vld [vmem:[%s3378_s2 + $0x568] sm:$0xff]  ;;  %v418_v57 = vld [vmem:[%s3378_s2 + $0x4e0] sm:$0xff] }
  0x9e   : > { %1870 = vmatprep.subr.mxu0 %v350_v59  ;;  %1905 = vmatprep.subr.mxu1 %v382_v60  ;;  %v450_v58 = vld [vmem:[%s3378_s2 + $0x5e0] sm:$0xff] }
  0x9f   : > { %1871 = vmatpush3.msra.mxu0 %v334_v61  ;;  %1906 = vmatpush3.msra.mxu1 %v366_v62  ;;  %v402_v59 = vld [vmem:[%s3378_s2 + $0x460] sm:$0xff]  ;;  %v417_v61 = vld [vmem:[%s3378_s2 + $0x4d8] sm:$0xff] }
  0xa0   : > { %1872 = vmatprep.subr.mxu0 %v349_v63  ;;  %1907 = vmatprep.subr.mxu1 %v381_v0  ;;  %v434_v60 = vld [vmem:[%s3378_s2 + $0x560] sm:$0xff]  ;;  %v449_v62 = vld [vmem:[%s3378_s2 + $0x5d8] sm:$0xff] }
  0xa1   : > { %1873 = vmatpush3.msra.mxu0 %v333_v1  ;;  %1908 = vmatpush3.msra.mxu1 %v365_v2  ;;  %v401_v63 = vld [vmem:[%s3378_s2 + $0x458] sm:$0xff]  ;;  %v416_v1 = vld [vmem:[%s3378_s2 + $0x4d0] sm:$0xff] }
  0xa2   : > { %1874 = vmatprep.subr.mxu0 %v348_v3  ;;  %1909 = vmatprep.subr.mxu1 %v380_v4  ;;  %v433_v0 = vld [vmem:[%s3378_s2 + $0x558] sm:$0xff]  ;;  %v448_v2 = vld [vmem:[%s3378_s2 + $0x5d0] sm:$0xff] }
  0xa3   : > { %1875 = vmatpush3.msra.mxu0 %v332_v5  ;;  %1910 = vmatpush3.msra.mxu1 %v364_v6  ;;  %v400_v3 = vld [vmem:[%s3378_s2 + $0x450] sm:$0xff]  ;;  %v415_v5 = vld [vmem:[%s3378_s2 + $0x4c8] sm:$0xff] }
  0xa4   : > { %1876 = vmatprep.subr.mxu0 %v347_v7  ;;  %1911 = vmatprep.subr.mxu1 %v379_v8  ;;  %v432_v4 = vld [vmem:[%s3378_s2 + $0x550] sm:$0xff]  ;;  %v447_v6 = vld [vmem:[%s3378_s2 + $0x5c8] sm:$0xff] }
  0xa5   : > { %1877 = vmatpush3.msra.mxu0 %v331_v9  ;;  %1912 = vmatpush3.msra.mxu1 %v363_v10  ;;  %v399_v7 = vld [vmem:[%s3378_s2 + $0x448] sm:$0xff]  ;;  %v414_v9 = vld [vmem:[%s3378_s2 + $0x4c0] sm:$0xff] }
  0xa6   : > { %1878 = vmatprep.subr.mxu0 %v346_v11  ;;  %1913 = vmatprep.subr.mxu1 %v378_v13  ;;  %v431_v8 = vld [vmem:[%s3378_s2 + $0x548] sm:$0xff]  ;;  %v446_v10 = vld [vmem:[%s3378_s2 + $0x5c0] sm:$0xff] }
  0xa7   : > { %1879 = vmatpush3.msra.mxu0 %v330_v14  ;;  %1914 = vmatpush3.msra.mxu1 %v362_v15  ;;  %v398_v11 = vld [vmem:[%s3378_s2 + $0x440] sm:$0xff]  ;;  %v413_v14 = vld [vmem:[%s3378_s2 + $0x4b8] sm:$0xff] }
  0xa8   : > { %1880 = vmatprep.subr.mxu0 %v345_v16  ;;  %1915 = vmatprep.subr.mxu1 %v377_v17  ;;  %v430_v13 = vld [vmem:[%s3378_s2 + $0x540] sm:$0xff]  ;;  %v445_v15 = vld [vmem:[%s3378_s2 + $0x5b8] sm:$0xff] }
  0xa9   : > { %1881 = vmatpush3.msra.mxu0 %v329_v18  ;;  %1916 = vmatpush3.msra.mxu1 %v361_v19  ;;  %v397_v16 = vld [vmem:[%s3378_s2 + $0x438] sm:$0xff]  ;;  %v412_v18 = vld [vmem:[%s3378_s2 + $0x4b0] sm:$0xff] }
  0xaa   : > { %1882 = vmatprep.subr.mxu0 %v344_v20  ;;  %1917 = vmatprep.subr.mxu1 %v376_v21  ;;  %v429_v17 = vld [vmem:[%s3378_s2 + $0x538] sm:$0xff]  ;;  %v444_v19 = vld [vmem:[%s3378_s2 + $0x5b0] sm:$0xff] }
  0xab   : > { %1883 = vmatpush3.msra.mxu0 %v328_v22  ;;  %1918 = vmatpush3.msra.mxu1 %v360_v23  ;;  %v396_v20 = vld [vmem:[%s3378_s2 + $0x430] sm:$0xff]  ;;  %v411_v22 = vld [vmem:[%s3378_s2 + $0x4a8] sm:$0xff] }
  0xac   : > { %1884 = vmatprep.subr.mxu0 %v343_v24  ;;  %1919 = vmatprep.subr.mxu1 %v375_v25  ;;  %v428_v21 = vld [vmem:[%s3378_s2 + $0x530] sm:$0xff]  ;;  %v443_v23 = vld [vmem:[%s3378_s2 + $0x5a8] sm:$0xff] }
  0xad   : > { %1885 = vmatpush3.msra.mxu0 %v327_v26  ;;  %1920 = vmatpush3.msra.mxu1 %v359_v27  ;;  %v395_v24 = vld [vmem:[%s3378_s2 + $0x428] sm:$0xff]  ;;  %v410_v26 = vld [vmem:[%s3378_s2 + $0x4a0] sm:$0xff] }
  0xae   : > { %1886 = vmatprep.subr.mxu0 %v342_v28  ;;  %1921 = vmatprep.subr.mxu1 %v374_v30  ;;  %v427_v25 = vld [vmem:[%s3378_s2 + $0x528] sm:$0xff]  ;;  %v442_v27 = vld [vmem:[%s3378_s2 + $0x5a0] sm:$0xff] }
  0xaf   : > { %1887 = vmatpush3.msra.mxu0 %v326_v36  ;;  %1922 = vmatpush3.msra.mxu1 %v358_v39  ;;  %v394_v28 = vld [vmem:[%s3378_s2 + $0x420] sm:$0xff]  ;;  %v393_v36 = vld [vmem:[%s3378_s2 + $0x418] sm:$0xff] }
  0xb0   : > { %723 = vmatmul.mubr.f32.vlgmr.msra.gmra.mxu0 %v250_v41  ;;  %793 = vmatmul.mubr.f32.vlgmr.msra.gmra.mxu1 %v252_v42  ;;  %v426_v30 = vld [vmem:[%s3378_s2 + $0x520] sm:$0xff]  ;;  %v425_v39 = vld [vmem:[%s3378_s2 + $0x518] sm:$0xff]  ;;  %v440_v41 = vld [vmem:[%s3378_s2 + $0x590] sm:$0xff] }
  0xb1   : > { %1926 = vmatprep.subr.mxu0 %v421_v43  ;;  %1961 = vmatprep.subr.mxu1 %v453_v44  ;;  %v392_v42 = vld [vmem:[%s3378_s2 + $0x410] sm:$0xff]  ;;  %v407_v44 = vld [vmem:[%s3378_s2 + $0x488] sm:$0xff] }
  0xb2   : > { %1927 = vmatpush3.msra.mxu0 %v405_v46  ;;  %862 = vmatprep.mubr.f32.mxu0 %v255_v47  ;;  %v424_v43 = vld [vmem:[%s3378_s2 + $0x510] sm:$0xff]  ;;  %v391_v46 = vld [vmem:[%s3378_s2 + $0x408] sm:$0xff] }
  0xb3   : > { %1962 = vmatpush3.msra.mxu1 %v437_v48  ;;  %932 = vmatprep.mubr.f32.mxu1 %v257_v49  ;;  %v423_v47 = vld [vmem:[%s3378_s2 + $0x508] sm:$0xff]  ;;  %v406_v48 = vld [vmem:[%s3378_s2 + $0x480] sm:$0xff] }
  0xb4   : > { %1928 = vmatprep.subr.mxu0 %v420_v50  ;;  %1963 = vmatprep.subr.mxu1 %v452_v51  ;;  %v438_v49 = vld [vmem:[%s3378_s2 + $0x580] sm:$0xff] }
  0xb5   : > { %1929 = vmatpush3.msra.mxu0 %v404_v52  ;;  %1964 = vmatpush3.msra.mxu1 %v436_v53  ;;  %v390_v50 = vld [vmem:[%s3378_s2 + $0x400] sm:$0xff]  ;;  %v485_v52 = vld [vmem:[%s3378_s2 + $0x6f8] sm:$0xff] }
  0xb6   : > { %1930 = vmatprep.subr.mxu0 %v419_v12  ;;  %1965 = vmatprep.subr.mxu1 %v451_v54  ;;  %v422_v51 = vld [vmem:[%s3378_s2 + $0x500] sm:$0xff]  ;;  %v517_v53 = vld [vmem:[%s3378_s2 + $0x7f8] sm:$0xff] }
  0xb7   : > { %1931 = vmatpush3.msra.mxu0 %v403_v55  ;;  %1966 = vmatpush3.msra.mxu1 %v435_v56  ;;  %v469_v12 = vld [vmem:[%s3378_s2 + $0x678] sm:$0xff]  ;;  %v484_v55 = vld [vmem:[%s3378_s2 + $0x6f0] sm:$0xff] }
  0xb8   : > { %1932 = vmatprep.subr.mxu0 %v418_v57  ;;  %1967 = vmatprep.subr.mxu1 %v450_v58  ;;  %v501_v54 = vld [vmem:[%s3378_s2 + $0x778] sm:$0xff]  ;;  %v516_v56 = vld [vmem:[%s3378_s2 + $0x7f0] sm:$0xff]  ;;  %v483_v57 = vld [vmem:[%s3378_s2 + $0x6e8] sm:$0xff] }
  0xb9   : > { %1933 = vmatpush3.msra.mxu0 %v402_v59  ;;  %1968 = vmatpush3.msra.mxu1 %v434_v60  ;;  %v515_v58 = vld [vmem:[%s3378_s2 + $0x7e8] sm:$0xff]  ;;  %v514_v60 = vld [vmem:[%s3378_s2 + $0x7e0] sm:$0xff] }
  0xba   : > { %1934 = vmatprep.subr.mxu0 %v417_v61  ;;  %1969 = vmatprep.subr.mxu1 %v449_v62  ;;  %v499_v59 = vld [vmem:[%s3378_s2 + $0x768] sm:$0xff]  ;;  %v466_v61 = vld [vmem:[%s3378_s2 + $0x660] sm:$0xff] }
  0xbb   : > { %1935 = vmatpush3.msra.mxu0 %v401_v63  ;;  %1970 = vmatpush3.msra.mxu1 %v433_v0  ;;  %v498_v62 = vld [vmem:[%s3378_s2 + $0x760] sm:$0xff]  ;;  %v481_v63 = vld [vmem:[%s3378_s2 + $0x6d8] sm:$0xff] }
  0xbc   : > { %1936 = vmatprep.subr.mxu0 %v416_v1  ;;  %1971 = vmatprep.subr.mxu1 %v448_v2  ;;  %v513_v0 = vld [vmem:[%s3378_s2 + $0x7d8] sm:$0xff] }
  0xbd   : > { %1937 = vmatpush3.msra.mxu0 %v400_v3  ;;  %1972 = vmatpush3.msra.mxu1 %v432_v4  ;;  %v465_v1 = vld [vmem:[%s3378_s2 + $0x658] sm:$0xff]  ;;  %v480_v3 = vld [vmem:[%s3378_s2 + $0x6d0] sm:$0xff] }
  0xbe   : > { %1938 = vmatprep.subr.mxu0 %v415_v5  ;;  %1973 = vmatprep.subr.mxu1 %v447_v6  ;;  %v497_v2 = vld [vmem:[%s3378_s2 + $0x758] sm:$0xff]  ;;  %v512_v4 = vld [vmem:[%s3378_s2 + $0x7d0] sm:$0xff] }
  0xbf   : > { %1939 = vmatpush3.msra.mxu0 %v399_v7  ;;  %1974 = vmatpush3.msra.mxu1 %v431_v8  ;;  %v464_v5 = vld [vmem:[%s3378_s2 + $0x650] sm:$0xff]  ;;  %v479_v7 = vld [vmem:[%s3378_s2 + $0x6c8] sm:$0xff] }
  0xc0   : > { %1940 = vmatprep.subr.mxu0 %v414_v9  ;;  %1975 = vmatprep.subr.mxu1 %v446_v10  ;;  %v496_v6 = vld [vmem:[%s3378_s2 + $0x750] sm:$0xff]  ;;  %v511_v8 = vld [vmem:[%s3378_s2 + $0x7c8] sm:$0xff] }
  0xc1   : > { %1941 = vmatpush3.msra.mxu0 %v398_v11  ;;  %1976 = vmatpush3.msra.mxu1 %v430_v13  ;;  %v463_v9 = vld [vmem:[%s3378_s2 + $0x648] sm:$0xff]  ;;  %v478_v11 = vld [vmem:[%s3378_s2 + $0x6c0] sm:$0xff] }
  0xc2   : > { %1942 = vmatprep.subr.mxu0 %v413_v14  ;;  %1977 = vmatprep.subr.mxu1 %v445_v15  ;;  %v495_v10 = vld [vmem:[%s3378_s2 + $0x748] sm:$0xff]  ;;  %v510_v13 = vld [vmem:[%s3378_s2 + $0x7c0] sm:$0xff] }
  0xc3   : > { %1943 = vmatpush3.msra.mxu0 %v397_v16  ;;  %1978 = vmatpush3.msra.mxu1 %v429_v17  ;;  %v462_v14 = vld [vmem:[%s3378_s2 + $0x640] sm:$0xff]  ;;  %v477_v16 = vld [vmem:[%s3378_s2 + $0x6b8] sm:$0xff] }
  0xc4   : > { %1944 = vmatprep.subr.mxu0 %v412_v18  ;;  %1979 = vmatprep.subr.mxu1 %v444_v19  ;;  %v494_v15 = vld [vmem:[%s3378_s2 + $0x740] sm:$0xff]  ;;  %v509_v17 = vld [vmem:[%s3378_s2 + $0x7b8] sm:$0xff] }
  0xc5   : > { %1945 = vmatpush3.msra.mxu0 %v396_v20  ;;  %1980 = vmatpush3.msra.mxu1 %v428_v21  ;;  %v461_v18 = vld [vmem:[%s3378_s2 + $0x638] sm:$0xff]  ;;  %v476_v20 = vld [vmem:[%s3378_s2 + $0x6b0] sm:$0xff] }
  0xc6   : > { %1946 = vmatprep.subr.mxu0 %v411_v22  ;;  %1981 = vmatprep.subr.mxu1 %v443_v23  ;;  %v493_v19 = vld [vmem:[%s3378_s2 + $0x738] sm:$0xff]  ;;  %v508_v21 = vld [vmem:[%s3378_s2 + $0x7b0] sm:$0xff] }
  0xc7   : > { %1947 = vmatpush3.msra.mxu0 %v395_v24  ;;  %1982 = vmatpush3.msra.mxu1 %v427_v25  ;;  %v460_v22 = vld [vmem:[%s3378_s2 + $0x630] sm:$0xff]  ;;  %v475_v24 = vld [vmem:[%s3378_s2 + $0x6a8] sm:$0xff] }
  0xc8   : > { %1948 = vmatprep.subr.mxu0 %v410_v26  ;;  %1983 = vmatprep.subr.mxu1 %v442_v27  ;;  %v492_v23 = vld [vmem:[%s3378_s2 + $0x730] sm:$0xff]  ;;  %v507_v25 = vld [vmem:[%s3378_s2 + $0x7a8] sm:$0xff] }
  0xc9   : > { %1949 = vmatpush3.msra.mxu0 %v394_v28  ;;  %1984 = vmatpush3.msra.mxu1 %v426_v30  ;;  %v459_v26 = vld [vmem:[%s3378_s2 + $0x628] sm:$0xff]  ;;  %v474_v28 = vld [vmem:[%s3378_s2 + $0x6a0] sm:$0xff] }
  0xca   : > { %1950 = vmatprep.subr.mxu0 %v409_v34  ;;  %1985 = vmatprep.subr.mxu1 %v441_v35  ;;  %v491_v27 = vld [vmem:[%s3378_s2 + $0x728] sm:$0xff]  ;;  %v506_v30 = vld [vmem:[%s3378_s2 + $0x7a0] sm:$0xff] }
  0xcb   : > { %1951 = vmatpush3.msra.mxu0 %v393_v36  ;;  %1986 = vmatpush3.msra.mxu1 %v425_v39  ;;  %v458_v34 = vld [vmem:[%s3378_s2 + $0x620] sm:$0xff]  ;;  %v473_v36 = vld [vmem:[%s3378_s2 + $0x698] sm:$0xff] }
  0xcc   : > { %1952 = vmatprep.subr.mxu0 %v408_v40  ;;  %1987 = vmatprep.subr.mxu1 %v440_v41  ;;  %v490_v35 = vld [vmem:[%s3378_s2 + $0x720] sm:$0xff]  ;;  %v505_v39 = vld [vmem:[%s3378_s2 + $0x798] sm:$0xff] }
  0xcd   : > { %1953 = vmatpush3.msra.mxu0 %v392_v42  ;;  %1988 = vmatpush3.msra.mxu1 %v424_v43  ;;  %v457_v40 = vld [vmem:[%s3378_s2 + $0x618] sm:$0xff]  ;;  %v472_v42 = vld [vmem:[%s3378_s2 + $0x690] sm:$0xff] }
  0xce   : > { %1954 = vmatprep.subr.mxu0 %v407_v44  ;;  %1989 = vmatprep.subr.mxu1 %v439_v45  ;;  %v489_v41 = vld [vmem:[%s3378_s2 + $0x718] sm:$0xff]  ;;  %v504_v43 = vld [vmem:[%s3378_s2 + $0x790] sm:$0xff] }
  0xcf   : > { %1955 = vmatpush3.msra.mxu0 %v391_v46  ;;  %1990 = vmatpush3.msra.mxu1 %v423_v47  ;;  %v456_v44 = vld [vmem:[%s3378_s2 + $0x610] sm:$0xff]  ;;  %v471_v46 = vld [vmem:[%s3378_s2 + $0x688] sm:$0xff] }
  0xd0   : > { %1956 = vmatprep.subr.mxu0 %v406_v48  ;;  %1991 = vmatprep.subr.mxu1 %v438_v49  ;;  %v488_v45 = vld [vmem:[%s3378_s2 + $0x710] sm:$0xff]  ;;  %v503_v47 = vld [vmem:[%s3378_s2 + $0x788] sm:$0xff] }
  0xd1   : > { %1957 = vmatpush3.msra.mxu0 %v390_v50  ;;  %1992 = vmatpush3.msra.mxu1 %v422_v51  ;;  %v455_v48 = vld [vmem:[%s3378_s2 + $0x608] sm:$0xff]  ;;  %v470_v50 = vld [vmem:[%s3378_s2 + $0x680] sm:$0xff] }
  0xd2   : > { %863 = vmatmul.mubr.f32.vlgmr.msra.gmra.mxu0 %v2559_v29  ;;  %933 = vmatmul.mubr.f32.vlgmr.msra.gmra.mxu1 %v2565_v31  ;;  %v468_v29 = vld [vmem:[%s3378_s2 + $0x670] sm:$0xff]  ;;  %v487_v49 = vld [vmem:[%s3378_s2 + $0x708] sm:$0xff]  ;;  %v502_v51 = vld [vmem:[%s3378_s2 + $0x780] sm:$0xff] }
  0xd3   : > { %1996 = vmatprep.subr.mxu0 %v485_v52  ;;  %2031 = vmatprep.subr.mxu1 %v517_v53  ;;  %v500_v31 = vld [vmem:[%s3378_s2 + $0x770] sm:$0xff]  ;;  %v454_v52 = vld [vmem:[%s3378_s2 + $0x600] sm:$0xff] }
  0xd4   : > { %1997 = vmatpush3.msra.mxu0 %v469_v12  ;;  %1002 = vmatprep.mubr.f32.mxu0 %v2568_v32  ;;  %v467_v32 = vld [vmem:[%s3378_s2 + $0x668] sm:$0xff]  ;;  %v486_v53 = vld [vmem:[%s3378_s2 + $0x700] sm:$0xff] }
  0xd5   : > { %2032 = vmatpush3.msra.mxu1 %v501_v54  ;;  %1072 = vmatprep.mubr.f32.mxu1 %v2571_v33  ;;  %v482_v33 = vld [vmem:[%s3378_s2 + $0x6e0] sm:$0xff] }
  0xd6   : > { %1998 = vmatprep.subr.mxu0 %v484_v55  ;;  %2033 = vmatprep.subr.mxu1 %v516_v56 }
  0xd7   : > { %1999 = vmatpush3.msra.mxu0 %v468_v29  ;;  %2034 = vmatpush3.msra.mxu1 %v500_v31 }
  0xd8   : > { %2000 = vmatprep.subr.mxu0 %v483_v57  ;;  %2035 = vmatprep.subr.mxu1 %v515_v58 }
  0xd9   : > { %2001 = vmatpush3.msra.mxu0 %v467_v32  ;;  %2036 = vmatpush3.msra.mxu1 %v499_v59 }
  0xda   : > { %2002 = vmatprep.subr.mxu0 %v482_v33  ;;  %2037 = vmatprep.subr.mxu1 %v514_v60 }
  0xdb   : > { %2003 = vmatpush3.msra.mxu0 %v466_v61  ;;  %2038 = vmatpush3.msra.mxu1 %v498_v62 }
  0xdc   : > { %2004 = vmatprep.subr.mxu0 %v481_v63  ;;  %2039 = vmatprep.subr.mxu1 %v513_v0 }
  0xdd   : > { %2005 = vmatpush3.msra.mxu0 %v465_v1  ;;  %2040 = vmatpush3.msra.mxu1 %v497_v2 }
  0xde   : > { %2006 = vmatprep.subr.mxu0 %v480_v3  ;;  %2041 = vmatprep.subr.mxu1 %v512_v4 }
  0xdf   : > { %2007 = vmatpush3.msra.mxu0 %v464_v5  ;;  %2042 = vmatpush3.msra.mxu1 %v496_v6 }
  0xe0   : > { %2008 = vmatprep.subr.mxu0 %v479_v7  ;;  %2043 = vmatprep.subr.mxu1 %v511_v8 }
  0xe1   : > { %2009 = vmatpush3.msra.mxu0 %v463_v9  ;;  %2044 = vmatpush3.msra.mxu1 %v495_v10 }
  0xe2   : > { %2010 = vmatprep.subr.mxu0 %v478_v11  ;;  %2045 = vmatprep.subr.mxu1 %v510_v13 }
  0xe3   : > { %2011 = vmatpush3.msra.mxu0 %v462_v14  ;;  %2046 = vmatpush3.msra.mxu1 %v494_v15 }
  0xe4   : > { %2012 = vmatprep.subr.mxu0 %v477_v16  ;;  %2047 = vmatprep.subr.mxu1 %v509_v17  ;;  %v1092_v17 = vld [vmem:[%s3379_s3 + $0x38] sm:$0xff] }
  0xe5   : > { %2013 = vmatpush3.msra.mxu0 %v461_v18  ;;  %2048 = vmatpush3.msra.mxu1 %v493_v19  ;;  %v3159_v18 = vand.u32 4294901760, %v1092_v17  ;;  %v1091_v19 = vld [vmem:[%s3379_s3 + $0x30] sm:$0xff] }
  0xe6   : > { %2014 = vmatprep.subr.mxu0 %v476_v20  ;;  %2049 = vmatprep.subr.mxu1 %v508_v21  ;;  %v3167_v21 = vand.u32 4294901760, %v1091_v19 }
  0xe7   : > { %2015 = vmatpush3.msra.mxu0 %v460_v22  ;;  %2050 = vmatpush3.msra.mxu1 %v492_v23  ;;  %v3165_v20 = vsub.f32 %v1092_v17, %v3159_v18  ;;  %v1090_v22 = vld [vmem:[%s3379_s3 + $0x28] sm:$0xff] }
  0xe8   : > { %2016 = vmatprep.subr.mxu0 %v475_v24  ;;  %2051 = vmatprep.subr.mxu1 %v507_v25  ;;  %v3174_v24 = vsub.f32 %v1091_v19, %v3167_v21  ;;  %v3176_v25 = vand.u32 4294901760, %v1090_v22 }
  0xe9   : > { %2017 = vmatpush3.msra.mxu0 %v459_v26  ;;  %2052 = vmatpush3.msra.mxu1 %v491_v27  ;;  %v1198_v23 = vand.u32 4294901760, %v3165_v20  ;;  %v1089_v26 = vld [vmem:[%s3379_s3 + $0x20] sm:$0xff] }
  0xea   : > { %2018 = vmatprep.subr.mxu0 %v474_v28  ;;  %2053 = vmatprep.subr.mxu1 %v506_v30  ;;  %v1205_v28 = vand.u32 4294901760, %v3174_v24  ;;  %v3186_v30 = vsub.f32 %v1090_v22, %v3176_v25 }
  0xeb   : > { %2019 = vmatpush3.msra.mxu0 %v458_v34  ;;  %2054 = vmatpush3.msra.mxu1 %v490_v35  ;;  %v1199_v27 = vsub.f32 %v3165_v20, %v1198_v23  ;;  %v3188_v34 = vand.u32 4294901760, %v1089_v26  ;;  %v1088_v35 = vld [vmem:[%s3379_s3 + $0x18] sm:$0xff] }
  0xec   : > { %2020 = vmatprep.subr.mxu0 %v473_v36  ;;  %2055 = vmatprep.subr.mxu1 %v505_v39  ;;  %v1206_v39 = vsub.f32 %v3174_v24, %v1205_v28 }
  0xed   : > { %2021 = vmatpush3.msra.mxu0 %v457_v40  ;;  %2056 = vmatpush3.msra.mxu1 %v489_v41  ;;  %v1200_v36 = vand.u32 4294901760, %v1199_v27  ;;  %v1212_v40 = vand.u32 4294901760, %v3186_v30  ;;  %v2271_v41 = vmov 0.0  }
  0xee   : > { %2022 = vmatprep.subr.mxu0 %v472_v42  ;;  %2057 = vmatprep.subr.mxu1 %v504_v43  ;;  %v3199_v42 = vsub.f32 %v1089_v26, %v3188_v34  ;;  %v3202_v43 = vand.u32 4294901760, %v1088_v35 }
  0xef   : > { %2023 = vmatpush3.msra.mxu0 %v456_v44  ;;  %2058 = vmatpush3.msra.mxu1 %v488_v45  ;;  %v1087_v44 = vld [vmem:[%s3379_s3 + $0x10] sm:$0xff]  ;;  %v1086_v45 = vld [vmem:[%s3379_s3 + $0x8] sm:$0xff] }
  0xf0   : > { %2024 = vmatprep.subr.mxu0 %v471_v46  ;;  %2059 = vmatprep.subr.mxu1 %v503_v47  ;;  %v1085_v46 = vld [vmem:[%s3379_s3] sm:$0xff]  ;;  %v1207_v47 = vand.u32 4294901760, %v1206_v39 }
  0xf1   : > { %2025 = vmatpush3.msra.mxu0 %v455_v48  ;;  %2060 = vmatpush3.msra.mxu1 %v487_v49  ;;  %v1213_v48 = vsub.f32 %v3186_v30, %v1212_v40  ;;  %v3217_v49 = vand.u32 4294901760, %v1087_v44 }
  0xf2   : > { %2026 = vmatprep.subr.mxu0 %v470_v50  ;;  %2061 = vmatprep.subr.mxu1 %v502_v51  ;;  %v3219_v50 = vand.u32 4294901760, %v1086_v45  ;;  %v1219_v51 = vand.u32 4294901760, %v3199_v42 }
  0xf3   : > { %2027 = vmatpush3.msra.mxu0 %v454_v52  ;;  %2062 = vmatpush3.msra.mxu1 %v486_v53  ;;  %v3224_v52 = vsub.f32 %v1088_v35, %v3202_v43  ;;  %v3227_v53 = vand.u32 4294901760, %v1085_v46 }
  0xf4   : > { %1003 = vmatmul.mubr.f32.vlgmr.msra.gmra.mxu0 %v2581_v37  ;;  %1073 = vmatmul.mubr.f32.vlgmr.msra.gmra.mxu1 %v2584_v38 }
  0xf5   : > { %2139 = vmatprep.subr.mxu1 %v2271_v41  ;;  %2120 = vmatprep.subr.mxu0 %v2271_v41 }
  0xf6   : > { %2140 = vmatpush3.msra.mxu1 %v1200_v36  ;;  %2121 = vmatpush3.msra.mxu0 %v3159_v18 }
  0xf7   : > { %2141 = vmatprep.subr.mxu1 %v2271_v41  ;;  %2122 = vmatprep.subr.mxu0 %v2271_v41 }
  0xf8   : > { %2142 = vmatpush3.msra.mxu1 %v1207_v47  ;;  %2123 = vmatpush3.msra.mxu0 %v3167_v21 }
  0xf9   : > { %2143 = vmatprep.subr.mxu1 %v2271_v41  ;;  %2124 = vmatprep.subr.mxu0 %v2271_v41 }
  0xfa   : > { %2125 = vmatpush3.msra.mxu0 %v3176_v25  ;;  %2155 = vmatprep.mubr.msk.f32.mxu1 %vm2272_vm3, %v2271_v41 }
  0xfb   : > { %2126 = vmatprep.subr.mxu0 %v2271_v41  ;;  %2136 = vmatprep.mubr.msk.f32.mxu0 %vm2272_vm3, %v2271_v41 }
  0xfc   : > { %2127 = vmatpush3.msra.mxu0 %v3188_v34 }
  0xfd   : > { %2128 = vmatprep.subr.mxu0 %v2271_v41 }
  0xfe   : > { %2129 = vmatpush3.msra.mxu0 %v3202_v43 }
  0xff   : > { %2130 = vmatprep.subr.mxu0 %v2271_v41 }
 0x100   : > { %2131 = vmatpush3.msra.mxu0 %v3217_v49 }
 0x101   : > { %2132 = vmatprep.subr.mxu0 %v2271_v41 }
 0x102   : > { %2133 = vmatpush3.msra.mxu0 %v3219_v50 }
 0x103   : > { %2134 = vmatprep.subr.mxu0 %v2271_v41 }
 0x104   : > { %2135 = vmatpush3.msra.mxu0 %v3227_v53 }
 0x105   : > { %2158 = vmatprep.subr.mxu0 %v2271_v41 }
 0x14f   : > { %v1818_v12 = vpop.f32.mrf.mxu0  ;;  %v1853_v54 = vpop.f32.mrf.mxu1 }
 0x151   : > { %v1819_v55 = vpop.f32.mrf.mxu0  ;;  %v1854_v29 = vpop.f32.mrf.mxu1 }
 0x152   : > { %v1820_v57 = vadd.f32 %v1819_v55, %v1818_v12  ;;  %v1855_v58 = vadd.f32 %v1854_v29, %v1853_v54  ;;  %v1214_v12 = vand.u32 4294901760, %v1213_v48  ;;  %v3231_v54 = vsub.f32 %v1087_v44, %v3217_v49 }
 0x153   : > { %v3234_v55 = vsub.f32 %v1086_v45, %v3219_v50  ;;  %v1226_v29 = vand.u32 4294901760, %v3224_v52 }
 0x154   : > { %v655_v60 = vadd.f32 %v1855_v58, %v1820_v57  ;;  %2144 = vmatpush3.msra.mxu1 %v1214_v12  ;;  %v1233_v57 = vand.u32 4294901760, %v3231_v54 }
 0x155   : > { %v1240_v58 = vand.u32 4294901760, %v3234_v55  ;;  %2145 = vmatprep.subr.mxu1 %v2271_v41 }
 0x170   : > { %v1888_v56 = vpop.f32.mrf.mxu0  ;;  %v1923_v32 = vpop.f32.mrf.mxu1 }
 0x172   : > { %v1889_v31 = vpop.f32.mrf.mxu0  ;;  %v1924_v61 = vpop.f32.mrf.mxu1 }
 0x173   : > { %v1890_v33 = vadd.f32 %v1889_v31, %v1888_v56  ;;  %v1925_v1 = vadd.f32 %v1924_v61, %v1923_v32  ;;  %v1220_v56 = vsub.f32 %v3199_v42, %v1219_v51  ;;  %v3243_v31 = vsub.f32 %v1085_v46, %v3227_v53 }
 0x174   : > { %v1241_v61 = vsub.f32 %v3234_v55, %v1240_v58 }
 0x175   : > { %v725_v63 = vadd.f32 %v1890_v33, %v655_v60  ;;  %v1221_v32 = vand.u32 4294901760, %v1220_v56  ;;  %v1247_v33 = vand.u32 4294901760, %v3243_v31  ;;  %v1234_v60 = vsub.f32 %v3231_v54, %v1233_v57 }
 0x177   : > { %v795_v2 = vadd.f32 %v1925_v1, %v725_v63  ;;  %2146 = vmatpush3.msra.mxu1 %v1221_v32  ;;  %v1248_v63 = vsub.f32 %v3243_v31, %v1247_v33  ;;  %v1242_v1 = vand.u32 4294901760, %v1241_v61 }
 0x178   : > { %2147 = vmatprep.subr.mxu1 %v2271_v41 }
 0x192   : > { %v1958_v59 = vpop.f32.mrf.mxu0  ;;  %v1993_v0 = vpop.f32.mrf.mxu1 }
 0x194   : > { %v1959_v62 = vpop.f32.mrf.mxu0  ;;  %v1994_v38 = vpop.f32.mrf.mxu1 }
 0x195   : > { %v1960_v37 = vadd.f32 %v1959_v62, %v1958_v59  ;;  %v1995_v6 = vadd.f32 %v1994_v38, %v1993_v0  ;;  %v1227_v59 = vsub.f32 %v3224_v52, %v1226_v29  ;;  %v1235_v0 = vand.u32 4294901760, %v1234_v60 }
 0x197   : > { %v865_v3 = vadd.f32 %v1960_v37, %v795_v2  ;;  %v1228_v62 = vand.u32 4294901760, %v1227_v59  ;;  %v1249_v37 = vand.u32 4294901760, %v1248_v63 }
 0x199   : > { %v935_v9 = vadd.f32 %v1995_v6, %v865_v3  ;;  %2148 = vmatpush3.msra.mxu1 %v1228_v62 }
 0x19a   : > { %2149 = vmatprep.subr.mxu1 %v2271_v41 }
 0x19b   : > { %2150 = vmatpush3.msra.mxu1 %v1235_v0 }
 0x19c   : > { %2151 = vmatprep.subr.mxu1 %v2271_v41 }
 0x19d   : > { %2152 = vmatpush3.msra.mxu1 %v1242_v1 }
 0x19e   : > { %2153 = vmatprep.subr.mxu1 %v2271_v41 }
 0x19f   : > { %2154 = vmatpush3.msra.mxu1 %v1249_v37 }
 0x1a0   : > { %2177 = vmatprep.subr.mxu1 %v2271_v41 }
 0x1b4   : > { %v2028_v4 = vpop.f32.mrf.mxu0  ;;  %v2063_v5 = vpop.f32.mrf.mxu1 }
 0x1b6   : > { %v2029_v7 = vpop.f32.mrf.mxu0  ;;  %v2064_v8 = vpop.f32.mrf.mxu1 }
 0x1b7   : > { %v2030_v10 = vadd.f32 %v2029_v7, %v2028_v4  ;;  %v2065_v13 = vadd.f32 %v2064_v8, %v2063_v5 }
 0x1b9   : > { %v1005_v11 = vadd.f32 %v2030_v10, %v935_v9 }
 0x1bb   : > { %v1075_v14 = vadd.f32 %v2065_v13, %v1005_v11 }
 0x1bd   : > { %v3152_v15 = vmul.f32 0.17677669, %v1075_v14 }
 0x1bf   : > { %v1079_v16 = vsel %vm242_vm1, %v3152_v15, -inf }
 0x1c0   : > { %1080 = vmax.xlane.f32.xlu1 %v1079_v16 }
 0x249   : > { %v1081_v2 = vpop.xlane.xlu1 %1080 }
 0x24a   : > { %v1082_v38 = vsub.f32 %v3152_v15, %v1081_v2 }
 0x24c   : > { %v1083_v3 = vmul.f32 1.442695, %v1082_v38 }
 0x24e   : > { %2252 = vpow2.f32 %v1083_v3 }
 0x25b   : > { %v2253_v4 = vpop.eup %2252 }
 0x25c   : > { %v1094_v5 = vsel %vm242_vm1, %v2253_v4, 0 }
 0x25d   : > { %v3284_v6 = vand.u32 4294901760, %v1094_v5 }
 0x25f   : > { %v1170_v7 = vsub.f32 %v1094_v5, %v3284_v6  ;;  %2156 = vmatmul.mubr.f32.vlgmr.msra.gmra.mxu1 %v3284_v6 }
 0x260   : > { %2178 = vmatpush3.msra.mxu1 %v3159_v18  ;;  %2193 = vmatprep.mubr.msk.f32.mxu1 %vm2272_vm3, %v2271_v41 }
 0x261   : > { %2179 = vmatprep.subr.mxu1 %v2271_v41  ;;  %v1171_v8 = vand.u32 4294901760, %v1170_v7 }
 0x262   : > { %2180 = vmatpush3.msra.mxu1 %v3167_v21 }
 0x263   : > { %2181 = vmatprep.subr.mxu1 %v2271_v41  ;;  %v1172_v9 = vsub.f32 %v1170_v7, %v1171_v8 }
 0x264   : > { %2182 = vmatpush3.msra.mxu1 %v3176_v25 }
 0x265   : > { %2183 = vmatprep.subr.mxu1 %v2271_v41  ;;  %v1173_v10 = vand.u32 4294901760, %v1172_v9 }
 0x266   : > { %2184 = vmatpush3.msra.mxu1 %v3188_v34 }
 0x267   : > { %2185 = vmatprep.subr.mxu1 %v2271_v41  ;;  %2137 = vmatmul.mubr.f32.vlgmr.msra.gmra.mxu0 %v1173_v10 }
 0x268   : > { %2159 = vmatpush3.msra.mxu0 %v3165_v20  ;;  %2186 = vmatpush3.msra.mxu1 %v3202_v43 }
 0x269   : > { %2160 = vmatprep.subr.mxu0 %v2271_v41  ;;  %2187 = vmatprep.subr.mxu1 %v2271_v41 }
 0x26a   : > { %2161 = vmatpush3.msra.mxu0 %v3174_v24  ;;  %2188 = vmatpush3.msra.mxu1 %v3217_v49 }
 0x26b   : > { %2162 = vmatprep.subr.mxu0 %v2271_v41  ;;  %2189 = vmatprep.subr.mxu1 %v2271_v41 }
 0x26c   : > { %2163 = vmatpush3.msra.mxu0 %v3186_v30  ;;  %2190 = vmatpush3.msra.mxu1 %v3219_v50 }
 0x26d   : > { %2164 = vmatprep.subr.mxu0 %v2271_v41  ;;  %2191 = vmatprep.subr.mxu1 %v2271_v41 }
 0x26e   : > { %2165 = vmatpush3.msra.mxu0 %v3199_v42  ;;  %2192 = vmatpush3.msra.mxu1 %v3227_v53 }
 0x26f   : > { %2166 = vmatprep.subr.mxu0 %v2271_v41  ;;  %2194 = vmatmul.mubr.f32.vlgmr.msra.gmra.mxu1 %v1171_v8 }
 0x270   : > { %2215 = vmatprep.subr.mxu1 %v2271_v41  ;;  %2167 = vmatpush3.msra.mxu0 %v3224_v52 }
 0x271   : > { %2216 = vmatpush3.msra.mxu1 %v3159_v18  ;;  %2168 = vmatprep.subr.mxu0 %v2271_v41 }
 0x272   : > { %2217 = vmatprep.subr.mxu1 %v2271_v41  ;;  %2169 = vmatpush3.msra.mxu0 %v3231_v54 }
 0x273   : > { %2218 = vmatpush3.msra.mxu1 %v3167_v21  ;;  %2170 = vmatprep.subr.mxu0 %v2271_v41 }
 0x274   : > { %2219 = vmatprep.subr.mxu1 %v2271_v41  ;;  %2171 = vmatpush3.msra.mxu0 %v3234_v55 }
 0x275   : > { %2220 = vmatpush3.msra.mxu1 %v3176_v25  ;;  %2172 = vmatprep.subr.mxu0 %v2271_v41 }
 0x276   : > { %2221 = vmatprep.subr.mxu1 %v2271_v41  ;;  %2173 = vmatpush3.msra.mxu0 %v3243_v31 }
 0x277   : > { %2174 = vmatprep.mubr.msk.f32.mxu0 %vm2272_vm3, %v2271_v41  ;;  %2222 = vmatpush3.msra.mxu1 %v3188_v34 }
 0x278   : > { %2175 = vmatmul.mubr.f32.vlgmr.msra.gmra.mxu0 %v1170_v7  ;;  %2196 = vmatprep.subr.mxu0 %v2271_v41 }
 0x279   : > { %2223 = vmatprep.subr.mxu1 %v2271_v41  ;;  %2197 = vmatpush3.msra.mxu0 %v1198_v23 }
 0x27a   : > { %2224 = vmatpush3.msra.mxu1 %v3202_v43  ;;  %2198 = vmatprep.subr.mxu0 %v2271_v41 }
 0x27b   : > { %2225 = vmatprep.subr.mxu1 %v2271_v41  ;;  %2199 = vmatpush3.msra.mxu0 %v1205_v28 }
 0x27c   : > { %2226 = vmatpush3.msra.mxu1 %v3217_v49  ;;  %2200 = vmatprep.subr.mxu0 %v2271_v41 }
 0x27d   : > { %2227 = vmatprep.subr.mxu1 %v2271_v41  ;;  %2201 = vmatpush3.msra.mxu0 %v1212_v40 }
 0x27e   : > { %2228 = vmatpush3.msra.mxu1 %v3219_v50  ;;  %2202 = vmatprep.subr.mxu0 %v2271_v41 }
 0x27f   : > { %2229 = vmatprep.subr.mxu1 %v2271_v41  ;;  %2203 = vmatpush3.msra.mxu0 %v1219_v51 }
 0x280   : > { %2230 = vmatpush3.msra.mxu1 %v3227_v53  ;;  %2231 = vmatprep.mubr.msk.f32.mxu1 %vm2272_vm3, %v2271_v41 }
 0x281   : > { %2204 = vmatprep.subr.mxu0 %v2271_v41  ;;  %2232 = vmatmul.mubr.f32.vlgmr.msra.gmra.mxu1 %v3284_v6 }
 0x282   : > { %2205 = vmatpush3.msra.mxu0 %v1226_v29  ;;  %2212 = vmatprep.mubr.msk.f32.mxu0 %vm2272_vm3, %v2271_v41 }
 0x283   : > { %2206 = vmatprep.subr.mxu0 %v2271_v41 }
 0x284   : > { %2207 = vmatpush3.msra.mxu0 %v1233_v57 }
 0x285   : > { %2208 = vmatprep.subr.mxu0 %v2271_v41 }
 0x286   : > { %2209 = vmatpush3.msra.mxu0 %v1240_v58 }
 0x287   : > { %2210 = vmatprep.subr.mxu0 %v2271_v41 }
 0x288   : > { %2211 = vmatpush3.msra.mxu0 %v1247_v33 }
 0x289   : > { %2213 = vmatmul.mubr.f32.vlgmr.msra.gmra.mxu0 %v3284_v6 }
 0x31f   : > { %v1286_v11 = vpop.f32.mrf.mxu1 }
 0x321   : > { %v2157_v13 = vpop.f32.mrf.mxu1 }
 0x327   : > { %v1175_v14 = vpop.f32.mrf.mxu0 }
 0x328   : > { %v1287_v21 = vadd.f32 %v1286_v11, %v1175_v14 }
 0x329   : > { %v2138_v15 = vpop.f32.mrf.mxu0 }
 0x32f   : > { %v1455_v16 = vpop.f32.mrf.mxu1 }
 0x331   : > { %v2195_v17 = vpop.f32.mrf.mxu1 }
 0x338   : > { %v1374_v18 = vpop.f32.mrf.mxu0 }
 0x339   : > { %v1375_v23 = vadd.f32 %v1374_v18, %v1287_v21 }
 0x33a   : > { %v2176_v19 = vpop.f32.mrf.mxu0 }
 0x33b   : > { %v1456_v24 = vadd.f32 %v1455_v16, %v1375_v23 }
 0x341   : > { %v1629_v20 = vpop.f32.mrf.mxu1 }
 0x343   : > { %v2233_v22 = vpop.f32.mrf.mxu1 }
 0x349   : > { %v1550_v25 = vpop.f32.mrf.mxu0 }
 0x34a   : > { %v1551_v26 = vadd.f32 %v1550_v25, %v1456_v24 }
 0x34b   : > { %v2214_v27 = vpop.f32.mrf.mxu0 }
 0x34c   : > { %v1630_v28 = vadd.f32 %v1629_v20, %v1551_v26 }
 0x34e   : > { %2254 = vrcp.f32 %v1630_v28 }
 0x35b   : > { %v2255_v30 = vpop.eup %2254 }
 0x35c   : > { %1640 = vrot.lane.b32.xlu0 %v2255_v30, %s2273_s5 }
 0x360   : > { %1636 = vrot.lane.b32.xlu0 %v2255_v30, %s2274_s6 }
 0x364   : > { %1648 = vrot.lane.b32.xlu0 %v2255_v30, %s2275_s7 }
 0x3ce   : > { %v1641_v34 = vpop.permute.xlu0 %1640 }
 0x3cf   : > { %v1643_v35 = vmul.f32 %v1641_v34, %v1630_v28 }
 0x3d1   : > { %v1663_v36 = vmul.f32 %v1643_v35, %v1643_v35  ;;  %v1654_v12 = vmul.f32 0.2857143, %v1643_v35 }
 0x3d2   : > { %v1637_v39 = vpop.permute.xlu0 %1636 }
 0x3d3   : > { %1665 = vrot.lane.b32.xlu0 %v1663_v36, %s2273_s5  ;;  %v1639_v40 = vmul.f32 %v1637_v39, %v1630_v28 }
 0x3d5   : > { %v1656_v41 = vmul.f32 %v1639_v40, %v1639_v40  ;;  %v1652_v53 = vmul.f32 0.2857143, %v1639_v40 }
 0x3d6   : > { %v1649_v42 = vpop.permute.xlu0 %1648 }
 0x3d7   : > { %1644 = vrot.lane.b32.xlu0 %v2255_v30, %s2276_s8  ;;  %v1651_v43 = vmul.f32 %v1649_v42, %v1630_v28 }
 0x3db   : > { %1658 = vrot.lane.b32.xlu0 %v1656_v41, %s2273_s5 }
 0x445   : > { %v1666_v44 = vpop.permute.xlu0 %1665 }
 0x446   : > { %v1668_v45 = vsub.f32 %v1651_v43, %v1666_v44 }
 0x448   : > { %v1669_v46 = vmul.f32 0.08163265, %v1668_v45 }
 0x449   : > { %v1645_v54 = vpop.permute.xlu0 %1644 }
 0x44a   : > { %v1678_v47 = vmax.f32 %v1669_v46, 1e-10  ;;  %v1647_v56 = vmul.f32 %v1645_v54, %v1630_v28 }
 0x44c   : > { %2256 = vrsqrt.f32 %v1678_v47  ;;  %vm1681_vm4 = vcmp.eq.f32.partialorder %v1678_v47, inf  ;;  %v1684_v50 = vand.u32 2147483648, %v1678_v47  ;;  %vm1683_vm5 = vcmp.eq.f32.partialorder %v1678_v47, 0.0 }
 0x44d   : > { %v1659_v55 = vpop.permute.xlu0 %1658 }
 0x44e   : > { %v1661_v29 = vsub.f32 %v1647_v56, %v1659_v55 }
 0x450   : > { %v1662_v31 = vmul.f32 0.08163265, %v1661_v29 }
 0x452   : > { %v1670_v57 = vmax.f32 %v1662_v31, 1e-10 }
 0x454   : > { %2258 = vrsqrt.f32 %v1670_v57  ;;  %vm1673_vm6 = vcmp.eq.f32.partialorder %v1670_v57, inf  ;;  %v1676_v33 = vand.u32 2147483648, %v1670_v57  ;;  %vm1675_vm7 = vcmp.eq.f32.partialorder %v1670_v57, 0.0 }
 0x459   : > { %v2257_v48 = vpop.eup %2256 }
 0x45a   : > { %v1680_v49 = vmul.f32 %v2257_v48, %v1678_v47 }
 0x45c   : > { %v1682_v51 = vsel %vm1681_vm4, %v1678_v47, %v1680_v49 }
 0x45d   : > { %v1685_v52 = vsel %vm1683_vm5, %v1684_v50, %v1682_v51 }
 0x45e   : > { %1687 = vrot.lane.b32.xlu0 %v1685_v52, %s2277_s9 }
 0x461   : > { %v2259_v58 = vpop.eup %2258 }
 0x462   : > { %1692 = vrot.lane.b32.xlu0 %v1652_v53, %s2277_s9  ;;  %v1672_v32 = vmul.f32 %v2259_v58, %v1670_v57 }
 0x464   : > { %v1674_v59 = vsel %vm1673_vm6, %v1670_v57, %v1672_v32 }
 0x465   : > { %v1677_v60 = vsel %vm1675_vm7, %v1676_v33, %v1674_v59 }
 0x466   : > { %1696 = vrot.lane.b32.xlu0 %v1654_v12, %s2277_s9 }
 0x4d0   : > { %v1688_v61 = vpop.permute.xlu0 %1687 }
 0x4d1   : > { %v1690_v62 = vadd.f32 %v1688_v61, %v1677_v60 }
 0x4d3   : > { %1700 = vrot.lane.b32.xlu1 %v1690_v62, %s2277_s9 }
 0x4d4   : > { %v1693_v63 = vpop.permute.xlu0 %1692 }
 0x4d8   : > { %v1697_v0 = vpop.permute.xlu0 %1696 }
 0x4d9   : > { %v1704_v1 = vsel %vm1703_vm8, %v1693_v63, %v1697_v0 }
 0x545   : > { %v1701_v37 = vpop.permute.xlu1 %1700 }
 0x546   : > { %v1706_v2 = vsel %vm1705_vm9, %v1704_v1, %v1701_v37 }
 0x547   : > { %1708 = vst.msk [vmem:[%s212_s12] sm:$0xff] %vm1707_vm10, %v1706_v2 }
 0x548 PF: > { %s14_s15 = sadd.s32 1, %s2266_s15  }
 0x549   : > { %p11_p4 = scmp.ge.s32.totalorder %s14_s15, 4  }
 0x54b   :  { %13 = sbr.rel (!%p11_p4) target bundleno = 1 (0x1), region = 69 }

</bundles_post_ra>
